<compile_context>
chip_gen: v7x
topology: tpu7x:2x2x1
jax: 0.10.0
libtpu: 0.0.40
codegen_flags: <defaults>
</compile_context>

<pallas_src>
import functools

import jax
import jax.numpy as jnp
import numpy as np
from jax.experimental import pallas as pl
from jax.experimental.pallas import tpu as pltpu


def _round_up(v, m):
    return (v + m - 1) // m * m


def _gated_conv_kernel(x_ref, masks_ref, w1_ref, w2_ref, b1_ref, b2_ref,
                       o_ref, taps_ref, *, c_in, width):
    """One block of B_blk images per grid step; (C, lanes) layout.

    x_ref    : (B_blk, cin_pad, HW)  f32   zero-padded input channels
    masks_ref: (9, HW)               f32   host-precomputed tap validity masks
    w1_ref   : (Ch, 9*cin_pad)       bf16  K index = (ky*3+kx)*cin_pad + ci
    w2_ref   : (2*Cin, 2*Ch)         bf16  unsplit 1x1 conv weights
    b1_ref   : (Ch, 1)               f32
    b2_ref   : (2*Cin, 1)            f32
    o_ref    : (B_blk, Cin, HW)      f32
    taps_ref : (9*cin_pad, B_blk*HW) bf16  VMEM scratch for the 9 shifted taps
    """
    b_blk, cin_pad, hw = x_ref.shape

    # ---- Build the (9*cin_pad, B_blk*HW) tap matrix in bf16 VMEM scratch. ----
    # tap k=(dy,dx): tap[p] = x[p + dy*W + dx] when that neighbour is in-image,
    # else 0.  Shifts go through pltpu.roll (XLU); the precomputed masks zero
    # both out-of-image taps and wrapped lanes (incl. cross-image wrap).
    for k in range(9):
        dy, dx = k // 3 - 1, k % 3 - 1
        d = dy * width + dx
        shift = (-d) % hw
        if d != 0:
            m = masks_ref[pl.ds(k, 1), :]                      # (1, HW) f32
        for b in range(b_blk):
            x = x_ref[b]                                       # (cin_pad, HW) f32
            t = pltpu.roll(x, shift, axis=1) if shift else x
            if d != 0:
                t = t * m
            taps_ref[pl.ds(k * cin_pad, cin_pad),
                     pl.ds(b * hw, hw)] = t.astype(taps_ref.dtype)

    # ---- 3x3 conv: single K = 9*cin_pad bf16 MXU matmul, f32 accumulation. ----
    h = jnp.dot(w1_ref[...], taps_ref[...],
                preferred_element_type=jnp.float32)            # (Ch, B_blk*HW)
    h = h + b1_ref[...]

    # ---- ConcatELU: one transcendental per element, two selects. ----
    e_m1 = jnp.exp(-jnp.abs(h)) - 1.0
    pos = h > 0
    elu_p = jnp.where(pos, h, e_m1)                            # elu(h)
    elu_n = jnp.where(pos, e_m1, -h)                           # elu(-h)
    act = jnp.concatenate([elu_p, elu_n], axis=0).astype(w2_ref.dtype)

    # ---- 1x1 conv: ONE fused K = 2*Ch matmul with the unsplit w2. ----
    out2 = jnp.dot(w2_ref[...], act,
                   preferred_element_type=jnp.float32) + b2_ref[...]

    # ---- Gated residual, per image (lane-dense: HW is a multiple of 128). ----
    # TODO(synk): if B_blk*HW ever exceeds ~8K lanes, chunk everything after
    # the tap loop over 512-1024-lane windows to bound vreg pressure.
    for b in range(b_blk):
        val = out2[:c_in, b * hw:(b + 1) * hw]
        gate = out2[c_in:, b * hw:(b + 1) * hw]
        o_ref[b] = x_ref[b][:c_in, :] + val * jax.nn.sigmoid(gate)


def _tap_masks(height, width):
    """(9, H*W) f32 masks: masks[k, p] = 1 iff pixel p's (dy,dx) neighbour
    (k = (dy+1)*3 + (dx+1)) lies inside the image."""
    hw = height * width
    p = np.arange(hw)
    row, col = p // width, p % width
    out = np.ones((9, hw), np.float32)
    for k in range(9):
        dy, dx = k // 3 - 1, k % 3 - 1
        ok = np.ones(hw, bool)
        if dy == -1:
            ok &= row >= 1
        elif dy == 1:
            ok &= row < height - 1
        if dx == -1:
            ok &= col >= 1
        elif dx == 1:
            ok &= col < width - 1
        out[k] = ok.astype(np.float32)
    return jnp.asarray(out)


def _vmem_bytes(b_blk, cin_pad, c_in, c_hid, hw):
    """Per-step VMEM footprint estimate (bytes)."""
    lanes = b_blk * hw
    taps = 9 * cin_pad * lanes * 2                       # bf16 scratch
    x_in = 2 * b_blk * cin_pad * hw * 4                  # double-buffered input
    out = 2 * b_blk * c_in * hw * 4                      # double-buffered output
    temps = (3 * c_hid + 2 * c_in) * lanes * 4           # h / elu_p / elu_n / out2
    weights = (9 * cin_pad * c_hid + 4 * c_in * c_hid) * 2 + (c_hid + 2 * c_in) * 4
    masks = 9 * hw * 4
    return taps + x_in + out + temps + weights + masks


def _choose_block_batch(n, cin_pad, c_in, c_hid, hw,
                        vmem_budget=20 * 2**20, max_lanes=8192):
    """Largest divisor of n that keeps >=2 grid steps (v7x: 2 TCs) and fits VMEM."""
    def ok(b):
        return (b * hw <= max_lanes
                and _vmem_bytes(b, cin_pad, c_in, c_hid, hw) <= vmem_budget)
    divs = [d for d in range(1, n + 1) if n % d == 0]
    good = [d for d in divs if n // d >= 2 and ok(d)]
    if good:
        return max(good)
    fit = [d for d in divs if ok(d)]
    return max(fit) if fit else 1


def gated_conv_pallas(x_nchw, w1, b1, w2, b2):
    """GatedConv forward.

    x_nchw: (N, Cin, H, W) f32
    w1    : (Ch, Cin, 3, 3) f32   (torch Conv2d weight layout)
    b1    : (Ch,) f32
    w2    : (2*Cin, 2*Ch) f32     (torch 1x1 Conv2d weight, spatial squeezed)
    b2    : (2*Cin,) f32
    """
    n, c_in, height, width = x_nchw.shape
    c_hid = w1.shape[0]
    hw = height * width
    cin_pad = _round_up(c_in, 8)     # 8-aligned tap slots -> unmasked stores

    # (N, Cin, H, W) -> (N, cin_pad, H*W): pure reshape + zero channel pad
    # (no-op whenever Cin is already a multiple of 8).
    x_flat = x_nchw.reshape(n, c_in, hw)
    if cin_pad != c_in:
        x_flat = jnp.pad(x_flat, ((0, 0), (0, cin_pad - c_in), (0, 0)))

    # 3x3 weights -> (Ch, 9*cin_pad) bf16 with K index = (ky*3+kx)*cin_pad + ci.
    # Padded-channel columns are zero (they meet the zero-padded tap rows).
    w1_k = jnp.transpose(w1, (0, 2, 3, 1)).reshape(c_hid, 9, c_in)
    if cin_pad != c_in:
        w1_k = jnp.pad(w1_k, ((0, 0), (0, 0), (0, cin_pad - c_in)))
    w1_flat = w1_k.reshape(c_hid, 9 * cin_pad).astype(jnp.bfloat16)

    w2_b = w2.astype(jnp.bfloat16)                       # kept unsplit (fused 1x1)
    b1_col = b1.reshape(c_hid, 1).astype(jnp.float32)
    b2_col = b2.reshape(2 * c_in, 1).astype(jnp.float32)
    masks = _tap_masks(height, width)

    b_blk = _choose_block_batch(n, cin_pad, c_in, c_hid, hw)
    grid = (n // b_blk,)
    est = _vmem_bytes(b_blk, cin_pad, c_in, c_hid, hw)
    vmem_limit = int(min(max(4 * est, 32 * 2**20), 48 * 2**20))  # < v7x 64 MiB

    kernel = functools.partial(_gated_conv_kernel, c_in=c_in, width=width)

    out_flat = pl.pallas_call(
        kernel,
        out_shape=jax.ShapeDtypeStruct((n, c_in, hw), jnp.float32),
        grid=grid,
        in_specs=[
            pl.BlockSpec((b_blk, cin_pad, hw), lambda i: (i, 0, 0)),
            pl.BlockSpec((9, hw), lambda i: (0, 0)),
            pl.BlockSpec((c_hid, 9 * cin_pad), lambda i: (0, 0)),
            pl.BlockSpec((2 * c_in, 2 * c_hid), lambda i: (0, 0)),
            pl.BlockSpec((c_hid, 1), lambda i: (0, 0)),
            pl.BlockSpec((2 * c_in, 1), lambda i: (0, 0)),
        ],
        out_specs=pl.BlockSpec((b_blk, c_in, hw), lambda i: (i, 0, 0)),
        scratch_shapes=[pltpu.VMEM((9 * cin_pad, b_blk * hw), jnp.bfloat16)],
        compiler_params=pltpu.CompilerParams(
            dimension_semantics=("parallel",),
            vmem_limit_bytes=vmem_limit),
    )(x_flat, masks, w1_flat, w2_b, b1_col, b2_col)

    return out_flat.reshape(n, c_in, height, width)


def gated_conv_ref(x, w1, b1, w2, b2):
    """Pure-JAX mirror of the PyTorch GatedConv forward (for checking)."""
    c_in = x.shape[1]
    hidden = jax.lax.conv_general_dilated(
        x, w1, window_strides=(1, 1), padding="SAME",
        dimension_numbers=("NCHW", "OIHW", "NCHW"),
        precision=jax.lax.Precision.HIGHEST)
    hidden = hidden + b1[None, :, None, None]
    act = jnp.concatenate([jax.nn.elu(hidden), jax.nn.elu(-hidden)], axis=1)
    out = jnp.einsum("oc,nchw->nohw", w2, act,
                     precision=jax.lax.Precision.HIGHEST)
    out = out + b2[None, :, None, None]
    val, gate = out[:, :c_in], out[:, c_in:]
    return x + val * jax.nn.sigmoid(gate)


if __name__ == "__main__":
    key = jax.random.PRNGKey(0)
    k_x, k_w1, k_b1, k_w2, k_b2 = jax.random.split(key, 5)

    # GatedConv(c_in=4, c_hidden=8) on a (8, 4, 16, 16) input
    # (8 images -> B_blk=4 per step, grid=(2,): exercises batching + even grid).
    N, C_IN, H, W = 8, 4, 16, 16
    C_HID = 8

    x = jax.random.normal(k_x, (N, C_IN, H, W), dtype=jnp.float32)
    w1 = 0.1 * jax.random.normal(k_w1, (C_HID, C_IN, 3, 3), dtype=jnp.float32)
    b1 = 0.1 * jax.random.normal(k_b1, (C_HID,), dtype=jnp.float32)
    w2 = 0.1 * jax.random.normal(k_w2, (2 * C_IN, 2 * C_HID), dtype=jnp.float32)
    b2 = 0.1 * jax.random.normal(k_b2, (2 * C_IN,), dtype=jnp.float32)

    out = jax.block_until_ready(gated_conv_pallas(x, w1, b1, w2, b2))
    ref = jax.block_until_ready(gated_conv_ref(x, w1, b1, w2, b2))

    assert out.shape == (N, C_IN, H, W)
    # bf16 matmul operands (f32 accumulation) vs an f32 HIGHEST-precision
    # reference -> compare at bf16-level tolerance.
    assert jnp.allclose(out, ref, rtol=2e-2, atol=2e-2), (
        "mismatch vs reference: max abs err = "
        f"{float(jnp.max(jnp.abs(out - ref)))}")
    print("KERNEL_OK")
</pallas_src>

<mosaic_0001>
module attributes {stable_mosaic.version = 11 : i64} {
  func.func @_gated_conv_kernel(%arg0: i32, %arg1: memref<4x8x256xf32, #tpu.memory_space<vmem>>, %arg2: memref<9x256xf32, #tpu.memory_space<vmem>>, %arg3: memref<8x72xbf16, #tpu.memory_space<vmem>>, %arg4: memref<8x16xbf16, #tpu.memory_space<vmem>>, %arg5: memref<8x1xf32, #tpu.memory_space<vmem>>, %arg6: memref<8x1xf32, #tpu.memory_space<vmem>>, %arg7: memref<4x4x256xf32, #tpu.memory_space<vmem>>, %arg8: memref<72x1024xbf16, #tpu.memory_space<vmem>>) attributes {dimension_semantics = [#tpu.dimension_semantics<parallel>], iteration_bounds = array<i64: 2>, scalar_prefetch = 0 : i64, scratch_operands = 1 : i64, tpu.core_type = #tpu.core_type<tc>, window_params = [{transform_indices = @transform_0, window_bounds = array<i64: 4, 8, 256>}, {pipeline_mode = #tpu.pipeline_mode<synchronous>, transform_indices = @transform_1, window_bounds = array<i64: 9, 256>}, {pipeline_mode = #tpu.pipeline_mode<synchronous>, transform_indices = @transform_2, window_bounds = array<i64: 8, 72>}, {pipeline_mode = #tpu.pipeline_mode<synchronous>, transform_indices = @transform_3, window_bounds = array<i64: 8, 16>}, {pipeline_mode = #tpu.pipeline_mode<synchronous>, transform_indices = @transform_4, window_bounds = array<i64: 8, 1>}, {pipeline_mode = #tpu.pipeline_mode<synchronous>, transform_indices = @transform_5, window_bounds = array<i64: 8, 1>}, {transform_indices = @transform_6, window_bounds = array<i64: 4, 4, 256>}]} {
    %c0 = arith.constant 0 : index
    %c0_0 = arith.constant 0 : index
    %0 = vector.load %arg2[%c0, %c0_0] : memref<9x256xf32, #tpu.memory_space<vmem>>, vector<1x256xf32>
    %c0_1 = arith.constant 0 : index
    %c0_2 = arith.constant 0 : index
    %c0_3 = arith.constant 0 : index
    %1 = vector.load %arg1[%c0_1, %c0_2, %c0_3] : memref<4x8x256xf32, #tpu.memory_space<vmem>>, vector<1x8x256xf32>
    %2 = vector.shape_cast %1 : vector<1x8x256xf32> to vector<8x256xf32>
    %c17_i32 = arith.constant 17 : i32
    %3 = tpu.dynamic_rotate %2 by %c17_i32 dim 1 : vector<8x256xf32>, i32 -> vector<8x256xf32>
    %4 = vector.broadcast %0 : vector<1x256xf32> to vector<8x256xf32>
    %5 = arith.mulf %3, %4 : vector<8x256xf32>
    %6 = arith.truncf %5 : vector<8x256xf32> to vector<8x256xbf16>
    %c0_4 = arith.constant 0 : index
    %c0_5 = arith.constant 0 : index
    %7 = vector.load %arg8[%c0_4, %c0_5] : memref<72x1024xbf16, #tpu.memory_space<vmem>>, vector<8x256xbf16>
    tpu.vector_store %arg8[%c0_4, %c0_5], %6 {strides = array<i32>} : memref<72x1024xbf16, #tpu.memory_space<vmem>>, vector<8x256xbf16>,
    %c1 = arith.constant 1 : index
    %c0_6 = arith.constant 0 : index
    %c0_7 = arith.constant 0 : index
    %8 = vector.load %arg1[%c1, %c0_6, %c0_7] : memref<4x8x256xf32, #tpu.memory_space<vmem>>, vector<1x8x256xf32>
    %9 = vector.shape_cast %8 : vector<1x8x256xf32> to vector<8x256xf32>
    %c17_i32_8 = arith.constant 17 : i32
    %10 = tpu.dynamic_rotate %9 by %c17_i32_8 dim 1 : vector<8x256xf32>, i32 -> vector<8x256xf32>
    %11 = vector.broadcast %0 : vector<1x256xf32> to vector<8x256xf32>
    %12 = arith.mulf %10, %11 : vector<8x256xf32>
    %13 = arith.truncf %12 : vector<8x256xf32> to vector<8x256xbf16>
    %c0_9 = arith.constant 0 : index
    %c256 = arith.constant 256 : index
    %14 = vector.load %arg8[%c0_9, %c256] : memref<72x1024xbf16, #tpu.memory_space<vmem>>, vector<8x256xbf16>
    tpu.vector_store %arg8[%c0_9, %c256], %13 {strides = array<i32>} : memref<72x1024xbf16, #tpu.memory_space<vmem>>, vector<8x256xbf16>,
    %c2 = arith.constant 2 : index
    %c0_10 = arith.constant 0 : index
    %c0_11 = arith.constant 0 : index
    %15 = vector.load %arg1[%c2, %c0_10, %c0_11] : memref<4x8x256xf32, #tpu.memory_space<vmem>>, vector<1x8x256xf32>
    %16 = vector.shape_cast %15 : vector<1x8x256xf32> to vector<8x256xf32>
    %c17_i32_12 = arith.constant 17 : i32
    %17 = tpu.dynamic_rotate %16 by %c17_i32_12 dim 1 : vector<8x256xf32>, i32 -> vector<8x256xf32>
    %18 = vector.broadcast %0 : vector<1x256xf32> to vector<8x256xf32>
    %19 = arith.mulf %17, %18 : vector<8x256xf32>
    %20 = arith.truncf %19 : vector<8x256xf32> to vector<8x256xbf16>
    %c0_13 = arith.constant 0 : index
    %c512 = arith.constant 512 : index
    %21 = vector.load %arg8[%c0_13, %c512] : memref<72x1024xbf16, #tpu.memory_space<vmem>>, vector<8x256xbf16>
    tpu.vector_store %arg8[%c0_13, %c512], %20 {strides = array<i32>} : memref<72x1024xbf16, #tpu.memory_space<vmem>>, vector<8x256xbf16>,
    %c3 = arith.constant 3 : index
    %c0_14 = arith.constant 0 : index
    %c0_15 = arith.constant 0 : index
    %22 = vector.load %arg1[%c3, %c0_14, %c0_15] : memref<4x8x256xf32, #tpu.memory_space<vmem>>, vector<1x8x256xf32>
    %23 = vector.shape_cast %22 : vector<1x8x256xf32> to vector<8x256xf32>
    %c17_i32_16 = arith.constant 17 : i32
    %24 = tpu.dynamic_rotate %23 by %c17_i32_16 dim 1 : vector<8x256xf32>, i32 -> vector<8x256xf32>
    %25 = vector.broadcast %0 : vector<1x256xf32> to vector<8x256xf32>
    %26 = arith.mulf %24, %25 : vector<8x256xf32>
    %27 = arith.truncf %26 : vector<8x256xf32> to vector<8x256xbf16>
    %c0_17 = arith.constant 0 : index
    %c768 = arith.constant 768 : index
    %28 = vector.load %arg8[%c0_17, %c768] : memref<72x1024xbf16, #tpu.memory_space<vmem>>, vector<8x256xbf16>
    tpu.vector_store %arg8[%c0_17, %c768], %27 {strides = array<i32>} : memref<72x1024xbf16, #tpu.memory_space<vmem>>, vector<8x256xbf16>,
    %c1_18 = arith.constant 1 : index
    %c0_19 = arith.constant 0 : index
    %29 = vector.load %arg2[%c1_18, %c0_19] : memref<9x256xf32, #tpu.memory_space<vmem>>, vector<1x256xf32>
    %c0_20 = arith.constant 0 : index
    %c0_21 = arith.constant 0 : index
    %c0_22 = arith.constant 0 : index
    %30 = vector.load %arg1[%c0_20, %c0_21, %c0_22] : memref<4x8x256xf32, #tpu.memory_space<vmem>>, vector<1x8x256xf32>
    %31 = vector.shape_cast %30 : vector<1x8x256xf32> to vector<8x256xf32>
    %c16_i32 = arith.constant 16 : i32
    %32 = tpu.dynamic_rotate %31 by %c16_i32 dim 1 : vector<8x256xf32>, i32 -> vector<8x256xf32>
    %33 = vector.broadcast %29 : vector<1x256xf32> to vector<8x256xf32>
    %34 = arith.mulf %32, %33 : vector<8x256xf32>
    %35 = arith.truncf %34 : vector<8x256xf32> to vector<8x256xbf16>
    %c8 = arith.constant 8 : index
    %c0_23 = arith.constant 0 : index
    %36 = vector.load %arg8[%c8, %c0_23] : memref<72x1024xbf16, #tpu.memory_space<vmem>>, vector<8x256xbf16>
    tpu.vector_store %arg8[%c8, %c0_23], %35 {strides = array<i32>} : memref<72x1024xbf16, #tpu.memory_space<vmem>>, vector<8x256xbf16>,
    %c1_24 = arith.constant 1 : index
    %c0_25 = arith.constant 0 : index
    %c0_26 = arith.constant 0 : index
    %37 = vector.load %arg1[%c1_24, %c0_25, %c0_26] : memref<4x8x256xf32, #tpu.memory_space<vmem>>, vector<1x8x256xf32>
    %38 = vector.shape_cast %37 : vector<1x8x256xf32> to vector<8x256xf32>
    %c16_i32_27 = arith.constant 16 : i32
    %39 = tpu.dynamic_rotate %38 by %c16_i32_27 dim 1 : vector<8x256xf32>, i32 -> vector<8x256xf32>
    %40 = vector.broadcast %29 : vector<1x256xf32> to vector<8x256xf32>
    %41 = arith.mulf %39, %40 : vector<8x256xf32>
    %42 = arith.truncf %41 : vector<8x256xf32> to vector<8x256xbf16>
    %c8_28 = arith.constant 8 : index
    %c256_29 = arith.constant 256 : index
    %43 = vector.load %arg8[%c8_28, %c256_29] : memref<72x1024xbf16, #tpu.memory_space<vmem>>, vector<8x256xbf16>
    tpu.vector_store %arg8[%c8_28, %c256_29], %42 {strides = array<i32>} : memref<72x1024xbf16, #tpu.memory_space<vmem>>, vector<8x256xbf16>,
    %c2_30 = arith.constant 2 : index
    %c0_31 = arith.constant 0 : index
    %c0_32 = arith.constant 0 : index
    %44 = vector.load %arg1[%c2_30, %c0_31, %c0_32] : memref<4x8x256xf32, #tpu.memory_space<vmem>>, vector<1x8x256xf32>
    %45 = vector.shape_cast %44 : vector<1x8x256xf32> to vector<8x256xf32>
    %c16_i32_33 = arith.constant 16 : i32
    %46 = tpu.dynamic_rotate %45 by %c16_i32_33 dim 1 : vector<8x256xf32>, i32 -> vector<8x256xf32>
    %47 = vector.broadcast %29 : vector<1x256xf32> to vector<8x256xf32>
    %48 = arith.mulf %46, %47 : vector<8x256xf32>
    %49 = arith.truncf %48 : vector<8x256xf32> to vector<8x256xbf16>
    %c8_34 = arith.constant 8 : index
    %c512_35 = arith.constant 512 : index
    %50 = vector.load %arg8[%c8_34, %c512_35] : memref<72x1024xbf16, #tpu.memory_space<vmem>>, vector<8x256xbf16>
    tpu.vector_store %arg8[%c8_34, %c512_35], %49 {strides = array<i32>} : memref<72x1024xbf16, #tpu.memory_space<vmem>>, vector<8x256xbf16>,
    %c3_36 = arith.constant 3 : index
    %c0_37 = arith.constant 0 : index
    %c0_38 = arith.constant 0 : index
    %51 = vector.load %arg1[%c3_36, %c0_37, %c0_38] : memref<4x8x256xf32, #tpu.memory_space<vmem>>, vector<1x8x256xf32>
    %52 = vector.shape_cast %51 : vector<1x8x256xf32> to vector<8x256xf32>
    %c16_i32_39 = arith.constant 16 : i32
    %53 = tpu.dynamic_rotate %52 by %c16_i32_39 dim 1 : vector<8x256xf32>, i32 -> vector<8x256xf32>
    %54 = vector.broadcast %29 : vector<1x256xf32> to vector<8x256xf32>
    %55 = arith.mulf %53, %54 : vector<8x256xf32>
    %56 = arith.truncf %55 : vector<8x256xf32> to vector<8x256xbf16>
    %c8_40 = arith.constant 8 : index
    %c768_41 = arith.constant 768 : index
    %57 = vector.load %arg8[%c8_40, %c768_41] : memref<72x1024xbf16, #tpu.memory_space<vmem>>, vector<8x256xbf16>
    tpu.vector_store %arg8[%c8_40, %c768_41], %56 {strides = array<i32>} : memref<72x1024xbf16, #tpu.memory_space<vmem>>, vector<8x256xbf16>,
    %c2_42 = arith.constant 2 : index
    %c0_43 = arith.constant 0 : index
    %58 = vector.load %arg2[%c2_42, %c0_43] : memref<9x256xf32, #tpu.memory_space<vmem>>, vector<1x256xf32>
    %c0_44 = arith.constant 0 : index
    %c0_45 = arith.constant 0 : index
    %c0_46 = arith.constant 0 : index
    %59 = vector.load %arg1[%c0_44, %c0_45, %c0_46] : memref<4x8x256xf32, #tpu.memory_space<vmem>>, vector<1x8x256xf32>
    %60 = vector.shape_cast %59 : vector<1x8x256xf32> to vector<8x256xf32>
    %c15_i32 = arith.constant 15 : i32
    %61 = tpu.dynamic_rotate %60 by %c15_i32 dim 1 : vector<8x256xf32>, i32 -> vector<8x256xf32>
    %62 = vector.broadcast %58 : vector<1x256xf32> to vector<8x256xf32>
    %63 = arith.mulf %61, %62 : vector<8x256xf32>
    %64 = arith.truncf %63 : vector<8x256xf32> to vector<8x256xbf16>
    %c16 = arith.constant 16 : index
    %c0_47 = arith.constant 0 : index
    %65 = vector.load %arg8[%c16, %c0_47] : memref<72x1024xbf16, #tpu.memory_space<vmem>>, vector<8x256xbf16>
    tpu.vector_store %arg8[%c16, %c0_47], %64 {strides = array<i32>} : memref<72x1024xbf16, #tpu.memory_space<vmem>>, vector<8x256xbf16>,
    %c1_48 = arith.constant 1 : index
    %c0_49 = arith.constant 0 : index
    %c0_50 = arith.constant 0 : index
    %66 = vector.load %arg1[%c1_48, %c0_49, %c0_50] : memref<4x8x256xf32, #tpu.memory_space<vmem>>, vector<1x8x256xf32>
    %67 = vector.shape_cast %66 : vector<1x8x256xf32> to vector<8x256xf32>
    %c15_i32_51 = arith.constant 15 : i32
    %68 = tpu.dynamic_rotate %67 by %c15_i32_51 dim 1 : vector<8x256xf32>, i32 -> vector<8x256xf32>
    %69 = vector.broadcast %58 : vector<1x256xf32> to vector<8x256xf32>
    %70 = arith.mulf %68, %69 : vector<8x256xf32>
    %71 = arith.truncf %70 : vector<8x256xf32> to vector<8x256xbf16>
    %c16_52 = arith.constant 16 : index
    %c256_53 = arith.constant 256 : index
    %72 = vector.load %arg8[%c16_52, %c256_53] : memref<72x1024xbf16, #tpu.memory_space<vmem>>, vector<8x256xbf16>
    tpu.vector_store %arg8[%c16_52, %c256_53], %71 {strides = array<i32>} : memref<72x1024xbf16, #tpu.memory_space<vmem>>, vector<8x256xbf16>,
    %c2_54 = arith.constant 2 : index
    %c0_55 = arith.constant 0 : index
    %c0_56 = arith.constant 0 : index
    %73 = vector.load %arg1[%c2_54, %c0_55, %c0_56] : memref<4x8x256xf32, #tpu.memory_space<vmem>>, vector<1x8x256xf32>
    %74 = vector.shape_cast %73 : vector<1x8x256xf32> to vector<8x256xf32>
    %c15_i32_57 = arith.constant 15 : i32
    %75 = tpu.dynamic_rotate %74 by %c15_i32_57 dim 1 : vector<8x256xf32>, i32 -> vector<8x256xf32>
    %76 = vector.broadcast %58 : vector<1x256xf32> to vector<8x256xf32>
    %77 = arith.mulf %75, %76 : vector<8x256xf32>
    %78 = arith.truncf %77 : vector<8x256xf32> to vector<8x256xbf16>
    %c16_58 = arith.constant 16 : index
    %c512_59 = arith.constant 512 : index
    %79 = vector.load %arg8[%c16_58, %c512_59] : memref<72x1024xbf16, #tpu.memory_space<vmem>>, vector<8x256xbf16>
    tpu.vector_store %arg8[%c16_58, %c512_59], %78 {strides = array<i32>} : memref<72x1024xbf16, #tpu.memory_space<vmem>>, vector<8x256xbf16>,
    %c3_60 = arith.constant 3 : index
    %c0_61 = arith.constant 0 : index
    %c0_62 = arith.constant 0 : index
    %80 = vector.load %arg1[%c3_60, %c0_61, %c0_62] : memref<4x8x256xf32, #tpu.memory_space<vmem>>, vector<1x8x256xf32>
    %81 = vector.shape_cast %80 : vector<1x8x256xf32> to vector<8x256xf32>
    %c15_i32_63 = arith.constant 15 : i32
    %82 = tpu.dynamic_rotate %81 by %c15_i32_63 dim 1 : vector<8x256xf32>, i32 -> vector<8x256xf32>
    %83 = vector.broadcast %58 : vector<1x256xf32> to vector<8x256xf32>
    %84 = arith.mulf %82, %83 : vector<8x256xf32>
    %85 = arith.truncf %84 : vector<8x256xf32> to vector<8x256xbf16>
    %c16_64 = arith.constant 16 : index
    %c768_65 = arith.constant 768 : index
    %86 = vector.load %arg8[%c16_64, %c768_65] : memref<72x1024xbf16, #tpu.memory_space<vmem>>, vector<8x256xbf16>
    tpu.vector_store %arg8[%c16_64, %c768_65], %85 {strides = array<i32>} : memref<72x1024xbf16, #tpu.memory_space<vmem>>, vector<8x256xbf16>,
    %c3_66 = arith.constant 3 : index
    %c0_67 = arith.constant 0 : index
    %87 = vector.load %arg2[%c3_66, %c0_67] : memref<9x256xf32, #tpu.memory_space<vmem>>, vector<1x256xf32>
    %c0_68 = arith.constant 0 : index
    %c0_69 = arith.constant 0 : index
    %c0_70 = arith.constant 0 : index
    %88 = vector.load %arg1[%c0_68, %c0_69, %c0_70] : memref<4x8x256xf32, #tpu.memory_space<vmem>>, vector<1x8x256xf32>
    %89 = vector.shape_cast %88 : vector<1x8x256xf32> to vector<8x256xf32>
    %c1_i32 = arith.constant 1 : i32
    %90 = tpu.dynamic_rotate %89 by %c1_i32 dim 1 : vector<8x256xf32>, i32 -> vector<8x256xf32>
    %91 = vector.broadcast %87 : vector<1x256xf32> to vector<8x256xf32>
    %92 = arith.mulf %90, %91 : vector<8x256xf32>
    %93 = arith.truncf %92 : vector<8x256xf32> to vector<8x256xbf16>
    %c24 = arith.constant 24 : index
    %c0_71 = arith.constant 0 : index
    %94 = vector.load %arg8[%c24, %c0_71] : memref<72x1024xbf16, #tpu.memory_space<vmem>>, vector<8x256xbf16>
    tpu.vector_store %arg8[%c24, %c0_71], %93 {strides = array<i32>} : memref<72x1024xbf16, #tpu.memory_space<vmem>>, vector<8x256xbf16>,
    %c1_72 = arith.constant 1 : index
    %c0_73 = arith.constant 0 : index
    %c0_74 = arith.constant 0 : index
    %95 = vector.load %arg1[%c1_72, %c0_73, %c0_74] : memref<4x8x256xf32, #tpu.memory_space<vmem>>, vector<1x8x256xf32>
    %96 = vector.shape_cast %95 : vector<1x8x256xf32> to vector<8x256xf32>
    %c1_i32_75 = arith.constant 1 : i32
    %97 = tpu.dynamic_rotate %96 by %c1_i32_75 dim 1 : vector<8x256xf32>, i32 -> vector<8x256xf32>
    %98 = vector.broadcast %87 : vector<1x256xf32> to vector<8x256xf32>
    %99 = arith.mulf %97, %98 : vector<8x256xf32>
    %100 = arith.truncf %99 : vector<8x256xf32> to vector<8x256xbf16>
    %c24_76 = arith.constant 24 : index
    %c256_77 = arith.constant 256 : index
    %101 = vector.load %arg8[%c24_76, %c256_77] : memref<72x1024xbf16, #tpu.memory_space<vmem>>, vector<8x256xbf16>
    tpu.vector_store %arg8[%c24_76, %c256_77], %100 {strides = array<i32>} : memref<72x1024xbf16, #tpu.memory_space<vmem>>, vector<8x256xbf16>,
    %c2_78 = arith.constant 2 : index
    %c0_79 = arith.constant 0 : index
    %c0_80 = arith.constant 0 : index
    %102 = vector.load %arg1[%c2_78, %c0_79, %c0_80] : memref<4x8x256xf32, #tpu.memory_space<vmem>>, vector<1x8x256xf32>
    %103 = vector.shape_cast %102 : vector<1x8x256xf32> to vector<8x256xf32>
    %c1_i32_81 = arith.constant 1 : i32
    %104 = tpu.dynamic_rotate %103 by %c1_i32_81 dim 1 : vector<8x256xf32>, i32 -> vector<8x256xf32>
    %105 = vector.broadcast %87 : vector<1x256xf32> to vector<8x256xf32>
    %106 = arith.mulf %104, %105 : vector<8x256xf32>
    %107 = arith.truncf %106 : vector<8x256xf32> to vector<8x256xbf16>
    %c24_82 = arith.constant 24 : index
    %c512_83 = arith.constant 512 : index
    %108 = vector.load %arg8[%c24_82, %c512_83] : memref<72x1024xbf16, #tpu.memory_space<vmem>>, vector<8x256xbf16>
    tpu.vector_store %arg8[%c24_82, %c512_83], %107 {strides = array<i32>} : memref<72x1024xbf16, #tpu.memory_space<vmem>>, vector<8x256xbf16>,
    %c3_84 = arith.constant 3 : index
    %c0_85 = arith.constant 0 : index
    %c0_86 = arith.constant 0 : index
    %109 = vector.load %arg1[%c3_84, %c0_85, %c0_86] : memref<4x8x256xf32, #tpu.memory_space<vmem>>, vector<1x8x256xf32>
    %110 = vector.shape_cast %109 : vector<1x8x256xf32> to vector<8x256xf32>
    %c1_i32_87 = arith.constant 1 : i32
    %111 = tpu.dynamic_rotate %110 by %c1_i32_87 dim 1 : vector<8x256xf32>, i32 -> vector<8x256xf32>
    %112 = vector.broadcast %87 : vector<1x256xf32> to vector<8x256xf32>
    %113 = arith.mulf %111, %112 : vector<8x256xf32>
    %114 = arith.truncf %113 : vector<8x256xf32> to vector<8x256xbf16>
    %c24_88 = arith.constant 24 : index
    %c768_89 = arith.constant 768 : index
    %115 = vector.load %arg8[%c24_88, %c768_89] : memref<72x1024xbf16, #tpu.memory_space<vmem>>, vector<8x256xbf16>
    tpu.vector_store %arg8[%c24_88, %c768_89], %114 {strides = array<i32>} : memref<72x1024xbf16, #tpu.memory_space<vmem>>, vector<8x256xbf16>,
    %c0_90 = arith.constant 0 : index
    %c0_91 = arith.constant 0 : index
    %c0_92 = arith.constant 0 : index
    %116 = vector.load %arg1[%c0_90, %c0_91, %c0_92] : memref<4x8x256xf32, #tpu.memory_space<vmem>>, vector<1x8x256xf32>
    %117 = vector.shape_cast %116 : vector<1x8x256xf32> to vector<8x256xf32>
    %118 = arith.truncf %117 : vector<8x256xf32> to vector<8x256xbf16>
    %c32 = arith.constant 32 : index
    %c0_93 = arith.constant 0 : index
    %119 = vector.load %arg8[%c32, %c0_93] : memref<72x1024xbf16, #tpu.memory_space<vmem>>, vector<8x256xbf16>
    tpu.vector_store %arg8[%c32, %c0_93], %118 {strides = array<i32>} : memref<72x1024xbf16, #tpu.memory_space<vmem>>, vector<8x256xbf16>,
    %c1_94 = arith.constant 1 : index
    %c0_95 = arith.constant 0 : index
    %c0_96 = arith.constant 0 : index
    %120 = vector.load %arg1[%c1_94, %c0_95, %c0_96] : memref<4x8x256xf32, #tpu.memory_space<vmem>>, vector<1x8x256xf32>
    %121 = vector.shape_cast %120 : vector<1x8x256xf32> to vector<8x256xf32>
    %122 = arith.truncf %121 : vector<8x256xf32> to vector<8x256xbf16>
    %c32_97 = arith.constant 32 : index
    %c256_98 = arith.constant 256 : index
    %123 = vector.load %arg8[%c32_97, %c256_98] : memref<72x1024xbf16, #tpu.memory_space<vmem>>, vector<8x256xbf16>
    tpu.vector_store %arg8[%c32_97, %c256_98], %122 {strides = array<i32>} : memref<72x1024xbf16, #tpu.memory_space<vmem>>, vector<8x256xbf16>,
    %c2_99 = arith.constant 2 : index
    %c0_100 = arith.constant 0 : index
    %c0_101 = arith.constant 0 : index
    %124 = vector.load %arg1[%c2_99, %c0_100, %c0_101] : memref<4x8x256xf32, #tpu.memory_space<vmem>>, vector<1x8x256xf32>
    %125 = vector.shape_cast %124 : vector<1x8x256xf32> to vector<8x256xf32>
    %126 = arith.truncf %125 : vector<8x256xf32> to vector<8x256xbf16>
    %c32_102 = arith.constant 32 : index
    %c512_103 = arith.constant 512 : index
    %127 = vector.load %arg8[%c32_102, %c512_103] : memref<72x1024xbf16, #tpu.memory_space<vmem>>, vector<8x256xbf16>
    tpu.vector_store %arg8[%c32_102, %c512_103], %126 {strides = array<i32>} : memref<72x1024xbf16, #tpu.memory_space<vmem>>, vector<8x256xbf16>,
    %c3_104 = arith.constant 3 : index
    %c0_105 = arith.constant 0 : index
    %c0_106 = arith.constant 0 : index
    %128 = vector.load %arg1[%c3_104, %c0_105, %c0_106] : memref<4x8x256xf32, #tpu.memory_space<vmem>>, vector<1x8x256xf32>
    %129 = vector.shape_cast %128 : vector<1x8x256xf32> to vector<8x256xf32>
    %130 = arith.truncf %129 : vector<8x256xf32> to vector<8x256xbf16>
    %c32_107 = arith.constant 32 : index
    %c768_108 = arith.constant 768 : index
    %131 = vector.load %arg8[%c32_107, %c768_108] : memref<72x1024xbf16, #tpu.memory_space<vmem>>, vector<8x256xbf16>
    tpu.vector_store %arg8[%c32_107, %c768_108], %130 {strides = array<i32>} : memref<72x1024xbf16, #tpu.memory_space<vmem>>, vector<8x256xbf16>,
    %c5 = arith.constant 5 : index
    %c0_109 = arith.constant 0 : index
    %132 = vector.load %arg2[%c5, %c0_109] : memref<9x256xf32, #tpu.memory_space<vmem>>, vector<1x256xf32>
    %c0_110 = arith.constant 0 : index
    %c0_111 = arith.constant 0 : index
    %c0_112 = arith.constant 0 : index
    %133 = vector.load %arg1[%c0_110, %c0_111, %c0_112] : memref<4x8x256xf32, #tpu.memory_space<vmem>>, vector<1x8x256xf32>
    %134 = vector.shape_cast %133 : vector<1x8x256xf32> to vector<8x256xf32>
    %c255_i32 = arith.constant 255 : i32
    %135 = tpu.dynamic_rotate %134 by %c255_i32 dim 1 : vector<8x256xf32>, i32 -> vector<8x256xf32>
    %136 = vector.broadcast %132 : vector<1x256xf32> to vector<8x256xf32>
    %137 = arith.mulf %135, %136 : vector<8x256xf32>
    %138 = arith.truncf %137 : vector<8x256xf32> to vector<8x256xbf16>
    %c40 = arith.constant 40 : index
    %c0_113 = arith.constant 0 : index
    %139 = vector.load %arg8[%c40, %c0_113] : memref<72x1024xbf16, #tpu.memory_space<vmem>>, vector<8x256xbf16>
    tpu.vector_store %arg8[%c40, %c0_113], %138 {strides = array<i32>} : memref<72x1024xbf16, #tpu.memory_space<vmem>>, vector<8x256xbf16>,
    %c1_114 = arith.constant 1 : index
    %c0_115 = arith.constant 0 : index
    %c0_116 = arith.constant 0 : index
    %140 = vector.load %arg1[%c1_114, %c0_115, %c0_116] : memref<4x8x256xf32, #tpu.memory_space<vmem>>, vector<1x8x256xf32>
    %141 = vector.shape_cast %140 : vector<1x8x256xf32> to vector<8x256xf32>
    %c255_i32_117 = arith.constant 255 : i32
    %142 = tpu.dynamic_rotate %141 by %c255_i32_117 dim 1 : vector<8x256xf32>, i32 -> vector<8x256xf32>
    %143 = vector.broadcast %132 : vector<1x256xf32> to vector<8x256xf32>
    %144 = arith.mulf %142, %143 : vector<8x256xf32>
    %145 = arith.truncf %144 : vector<8x256xf32> to vector<8x256xbf16>
    %c40_118 = arith.constant 40 : index
    %c256_119 = arith.constant 256 : index
    %146 = vector.load %arg8[%c40_118, %c256_119] : memref<72x1024xbf16, #tpu.memory_space<vmem>>, vector<8x256xbf16>
    tpu.vector_store %arg8[%c40_118, %c256_119], %145 {strides = array<i32>} : memref<72x1024xbf16, #tpu.memory_space<vmem>>, vector<8x256xbf16>,
    %c2_120 = arith.constant 2 : index
    %c0_121 = arith.constant 0 : index
    %c0_122 = arith.constant 0 : index
    %147 = vector.load %arg1[%c2_120, %c0_121, %c0_122] : memref<4x8x256xf32, #tpu.memory_space<vmem>>, vector<1x8x256xf32>
    %148 = vector.shape_cast %147 : vector<1x8x256xf32> to vector<8x256xf32>
    %c255_i32_123 = arith.constant 255 : i32
    %149 = tpu.dynamic_rotate %148 by %c255_i32_123 dim 1 : vector<8x256xf32>, i32 -> vector<8x256xf32>
    %150 = vector.broadcast %132 : vector<1x256xf32> to vector<8x256xf32>
    %151 = arith.mulf %149, %150 : vector<8x256xf32>
    %152 = arith.truncf %151 : vector<8x256xf32> to vector<8x256xbf16>
    %c40_124 = arith.constant 40 : index
    %c512_125 = arith.constant 512 : index
    %153 = vector.load %arg8[%c40_124, %c512_125] : memref<72x1024xbf16, #tpu.memory_space<vmem>>, vector<8x256xbf16>
    tpu.vector_store %arg8[%c40_124, %c512_125], %152 {strides = array<i32>} : memref<72x1024xbf16, #tpu.memory_space<vmem>>, vector<8x256xbf16>,
    %c3_126 = arith.constant 3 : index
    %c0_127 = arith.constant 0 : index
    %c0_128 = arith.constant 0 : index
    %154 = vector.load %arg1[%c3_126, %c0_127, %c0_128] : memref<4x8x256xf32, #tpu.memory_space<vmem>>, vector<1x8x256xf32>
    %155 = vector.shape_cast %154 : vector<1x8x256xf32> to vector<8x256xf32>
    %c255_i32_129 = arith.constant 255 : i32
    %156 = tpu.dynamic_rotate %155 by %c255_i32_129 dim 1 : vector<8x256xf32>, i32 -> vector<8x256xf32>
    %157 = vector.broadcast %132 : vector<1x256xf32> to vector<8x256xf32>
    %158 = arith.mulf %156, %157 : vector<8x256xf32>
    %159 = arith.truncf %158 : vector<8x256xf32> to vector<8x256xbf16>
    %c40_130 = arith.constant 40 : index
    %c768_131 = arith.constant 768 : index
    %160 = vector.load %arg8[%c40_130, %c768_131] : memref<72x1024xbf16, #tpu.memory_space<vmem>>, vector<8x256xbf16>
    tpu.vector_store %arg8[%c40_130, %c768_131], %159 {strides = array<i32>} : memref<72x1024xbf16, #tpu.memory_space<vmem>>, vector<8x256xbf16>,
    %c6 = arith.constant 6 : index
    %c0_132 = arith.constant 0 : index
    %161 = vector.load %arg2[%c6, %c0_132] : memref<9x256xf32, #tpu.memory_space<vmem>>, vector<1x256xf32>
    %c0_133 = arith.constant 0 : index
    %c0_134 = arith.constant 0 : index
    %c0_135 = arith.constant 0 : index
    %162 = vector.load %arg1[%c0_133, %c0_134, %c0_135] : memref<4x8x256xf32, #tpu.memory_space<vmem>>, vector<1x8x256xf32>
    %163 = vector.shape_cast %162 : vector<1x8x256xf32> to vector<8x256xf32>
    %c241_i32 = arith.constant 241 : i32
    %164 = tpu.dynamic_rotate %163 by %c241_i32 dim 1 : vector<8x256xf32>, i32 -> vector<8x256xf32>
    %165 = vector.broadcast %161 : vector<1x256xf32> to vector<8x256xf32>
    %166 = arith.mulf %164, %165 : vector<8x256xf32>
    %167 = arith.truncf %166 : vector<8x256xf32> to vector<8x256xbf16>
    %c48 = arith.constant 48 : index
    %c0_136 = arith.constant 0 : index
    %168 = vector.load %arg8[%c48, %c0_136] : memref<72x1024xbf16, #tpu.memory_space<vmem>>, vector<8x256xbf16>
    tpu.vector_store %arg8[%c48, %c0_136], %167 {strides = array<i32>} : memref<72x1024xbf16, #tpu.memory_space<vmem>>, vector<8x256xbf16>,
    %c1_137 = arith.constant 1 : index
    %c0_138 = arith.constant 0 : index
    %c0_139 = arith.constant 0 : index
    %169 = vector.load %arg1[%c1_137, %c0_138, %c0_139] : memref<4x8x256xf32, #tpu.memory_space<vmem>>, vector<1x8x256xf32>
    %170 = vector.shape_cast %169 : vector<1x8x256xf32> to vector<8x256xf32>
    %c241_i32_140 = arith.constant 241 : i32
    %171 = tpu.dynamic_rotate %170 by %c241_i32_140 dim 1 : vector<8x256xf32>, i32 -> vector<8x256xf32>
    %172 = vector.broadcast %161 : vector<1x256xf32> to vector<8x256xf32>
    %173 = arith.mulf %171, %172 : vector<8x256xf32>
    %174 = arith.truncf %173 : vector<8x256xf32> to vector<8x256xbf16>
    %c48_141 = arith.constant 48 : index
    %c256_142 = arith.constant 256 : index
    %175 = vector.load %arg8[%c48_141, %c256_142] : memref<72x1024xbf16, #tpu.memory_space<vmem>>, vector<8x256xbf16>
    tpu.vector_store %arg8[%c48_141, %c256_142], %174 {strides = array<i32>} : memref<72x1024xbf16, #tpu.memory_space<vmem>>, vector<8x256xbf16>,
    %c2_143 = arith.constant 2 : index
    %c0_144 = arith.constant 0 : index
    %c0_145 = arith.constant 0 : index
    %176 = vector.load %arg1[%c2_143, %c0_144, %c0_145] : memref<4x8x256xf32, #tpu.memory_space<vmem>>, vector<1x8x256xf32>
    %177 = vector.shape_cast %176 : vector<1x8x256xf32> to vector<8x256xf32>
    %c241_i32_146 = arith.constant 241 : i32
    %178 = tpu.dynamic_rotate %177 by %c241_i32_146 dim 1 : vector<8x256xf32>, i32 -> vector<8x256xf32>
    %179 = vector.broadcast %161 : vector<1x256xf32> to vector<8x256xf32>
    %180 = arith.mulf %178, %179 : vector<8x256xf32>
    %181 = arith.truncf %180 : vector<8x256xf32> to vector<8x256xbf16>
    %c48_147 = arith.constant 48 : index
    %c512_148 = arith.constant 512 : index
    %182 = vector.load %arg8[%c48_147, %c512_148] : memref<72x1024xbf16, #tpu.memory_space<vmem>>, vector<8x256xbf16>
    tpu.vector_store %arg8[%c48_147, %c512_148], %181 {strides = array<i32>} : memref<72x1024xbf16, #tpu.memory_space<vmem>>, vector<8x256xbf16>,
    %c3_149 = arith.constant 3 : index
    %c0_150 = arith.constant 0 : index
    %c0_151 = arith.constant 0 : index
    %183 = vector.load %arg1[%c3_149, %c0_150, %c0_151] : memref<4x8x256xf32, #tpu.memory_space<vmem>>, vector<1x8x256xf32>
    %184 = vector.shape_cast %183 : vector<1x8x256xf32> to vector<8x256xf32>
    %c241_i32_152 = arith.constant 241 : i32
    %185 = tpu.dynamic_rotate %184 by %c241_i32_152 dim 1 : vector<8x256xf32>, i32 -> vector<8x256xf32>
    %186 = vector.broadcast %161 : vector<1x256xf32> to vector<8x256xf32>
    %187 = arith.mulf %185, %186 : vector<8x256xf32>
    %188 = arith.truncf %187 : vector<8x256xf32> to vector<8x256xbf16>
    %c48_153 = arith.constant 48 : index
    %c768_154 = arith.constant 768 : index
    %189 = vector.load %arg8[%c48_153, %c768_154] : memref<72x1024xbf16, #tpu.memory_space<vmem>>, vector<8x256xbf16>
    tpu.vector_store %arg8[%c48_153, %c768_154], %188 {strides = array<i32>} : memref<72x1024xbf16, #tpu.memory_space<vmem>>, vector<8x256xbf16>,
    %c7 = arith.constant 7 : index
    %c0_155 = arith.constant 0 : index
    %190 = vector.load %arg2[%c7, %c0_155] : memref<9x256xf32, #tpu.memory_space<vmem>>, vector<1x256xf32>
    %c0_156 = arith.constant 0 : index
    %c0_157 = arith.constant 0 : index
    %c0_158 = arith.constant 0 : index
    %191 = vector.load %arg1[%c0_156, %c0_157, %c0_158] : memref<4x8x256xf32, #tpu.memory_space<vmem>>, vector<1x8x256xf32>
    %192 = vector.shape_cast %191 : vector<1x8x256xf32> to vector<8x256xf32>
    %c240_i32 = arith.constant 240 : i32
    %193 = tpu.dynamic_rotate %192 by %c240_i32 dim 1 : vector<8x256xf32>, i32 -> vector<8x256xf32>
    %194 = vector.broadcast %190 : vector<1x256xf32> to vector<8x256xf32>
    %195 = arith.mulf %193, %194 : vector<8x256xf32>
    %196 = arith.truncf %195 : vector<8x256xf32> to vector<8x256xbf16>
    %c56 = arith.constant 56 : index
    %c0_159 = arith.constant 0 : index
    %197 = vector.load %arg8[%c56, %c0_159] : memref<72x1024xbf16, #tpu.memory_space<vmem>>, vector<8x256xbf16>
    tpu.vector_store %arg8[%c56, %c0_159], %196 {strides = array<i32>} : memref<72x1024xbf16, #tpu.memory_space<vmem>>, vector<8x256xbf16>,
    %c1_160 = arith.constant 1 : index
    %c0_161 = arith.constant 0 : index
    %c0_162 = arith.constant 0 : index
    %198 = vector.load %arg1[%c1_160, %c0_161, %c0_162] : memref<4x8x256xf32, #tpu.memory_space<vmem>>, vector<1x8x256xf32>
    %199 = vector.shape_cast %198 : vector<1x8x256xf32> to vector<8x256xf32>
    %c240_i32_163 = arith.constant 240 : i32
    %200 = tpu.dynamic_rotate %199 by %c240_i32_163 dim 1 : vector<8x256xf32>, i32 -> vector<8x256xf32>
    %201 = vector.broadcast %190 : vector<1x256xf32> to vector<8x256xf32>
    %202 = arith.mulf %200, %201 : vector<8x256xf32>
    %203 = arith.truncf %202 : vector<8x256xf32> to vector<8x256xbf16>
    %c56_164 = arith.constant 56 : index
    %c256_165 = arith.constant 256 : index
    %204 = vector.load %arg8[%c56_164, %c256_165] : memref<72x1024xbf16, #tpu.memory_space<vmem>>, vector<8x256xbf16>
    tpu.vector_store %arg8[%c56_164, %c256_165], %203 {strides = array<i32>} : memref<72x1024xbf16, #tpu.memory_space<vmem>>, vector<8x256xbf16>,
    %c2_166 = arith.constant 2 : index
    %c0_167 = arith.constant 0 : index
    %c0_168 = arith.constant 0 : index
    %205 = vector.load %arg1[%c2_166, %c0_167, %c0_168] : memref<4x8x256xf32, #tpu.memory_space<vmem>>, vector<1x8x256xf32>
    %206 = vector.shape_cast %205 : vector<1x8x256xf32> to vector<8x256xf32>
    %c240_i32_169 = arith.constant 240 : i32
    %207 = tpu.dynamic_rotate %206 by %c240_i32_169 dim 1 : vector<8x256xf32>, i32 -> vector<8x256xf32>
    %208 = vector.broadcast %190 : vector<1x256xf32> to vector<8x256xf32>
    %209 = arith.mulf %207, %208 : vector<8x256xf32>
    %210 = arith.truncf %209 : vector<8x256xf32> to vector<8x256xbf16>
    %c56_170 = arith.constant 56 : index
    %c512_171 = arith.constant 512 : index
    %211 = vector.load %arg8[%c56_170, %c512_171] : memref<72x1024xbf16, #tpu.memory_space<vmem>>, vector<8x256xbf16>
    tpu.vector_store %arg8[%c56_170, %c512_171], %210 {strides = array<i32>} : memref<72x1024xbf16, #tpu.memory_space<vmem>>, vector<8x256xbf16>,
    %c3_172 = arith.constant 3 : index
    %c0_173 = arith.constant 0 : index
    %c0_174 = arith.constant 0 : index
    %212 = vector.load %arg1[%c3_172, %c0_173, %c0_174] : memref<4x8x256xf32, #tpu.memory_space<vmem>>, vector<1x8x256xf32>
    %213 = vector.shape_cast %212 : vector<1x8x256xf32> to vector<8x256xf32>
    %c240_i32_175 = arith.constant 240 : i32
    %214 = tpu.dynamic_rotate %213 by %c240_i32_175 dim 1 : vector<8x256xf32>, i32 -> vector<8x256xf32>
    %215 = vector.broadcast %190 : vector<1x256xf32> to vector<8x256xf32>
    %216 = arith.mulf %214, %215 : vector<8x256xf32>
    %217 = arith.truncf %216 : vector<8x256xf32> to vector<8x256xbf16>
    %c56_176 = arith.constant 56 : index
    %c768_177 = arith.constant 768 : index
    %218 = vector.load %arg8[%c56_176, %c768_177] : memref<72x1024xbf16, #tpu.memory_space<vmem>>, vector<8x256xbf16>
    tpu.vector_store %arg8[%c56_176, %c768_177], %217 {strides = array<i32>} : memref<72x1024xbf16, #tpu.memory_space<vmem>>, vector<8x256xbf16>,
    %c8_178 = arith.constant 8 : index
    %c0_179 = arith.constant 0 : index
    %219 = vector.load %arg2[%c8_178, %c0_179] : memref<9x256xf32, #tpu.memory_space<vmem>>, vector<1x256xf32>
    %c0_180 = arith.constant 0 : index
    %c0_181 = arith.constant 0 : index
    %c0_182 = arith.constant 0 : index
    %220 = vector.load %arg1[%c0_180, %c0_181, %c0_182] : memref<4x8x256xf32, #tpu.memory_space<vmem>>, vector<1x8x256xf32>
    %221 = vector.shape_cast %220 : vector<1x8x256xf32> to vector<8x256xf32>
    %c239_i32 = arith.constant 239 : i32
    %222 = tpu.dynamic_rotate %221 by %c239_i32 dim 1 : vector<8x256xf32>, i32 -> vector<8x256xf32>
    %223 = vector.broadcast %219 : vector<1x256xf32> to vector<8x256xf32>
    %224 = arith.mulf %222, %223 : vector<8x256xf32>
    %225 = arith.truncf %224 : vector<8x256xf32> to vector<8x256xbf16>
    %c64 = arith.constant 64 : index
    %c0_183 = arith.constant 0 : index
    %226 = vector.load %arg8[%c64, %c0_183] : memref<72x1024xbf16, #tpu.memory_space<vmem>>, vector<8x256xbf16>
    tpu.vector_store %arg8[%c64, %c0_183], %225 {strides = array<i32>} : memref<72x1024xbf16, #tpu.memory_space<vmem>>, vector<8x256xbf16>,
    %c1_184 = arith.constant 1 : index
    %c0_185 = arith.constant 0 : index
    %c0_186 = arith.constant 0 : index
    %227 = vector.load %arg1[%c1_184, %c0_185, %c0_186] : memref<4x8x256xf32, #tpu.memory_space<vmem>>, vector<1x8x256xf32>
    %228 = vector.shape_cast %227 : vector<1x8x256xf32> to vector<8x256xf32>
    %c239_i32_187 = arith.constant 239 : i32
    %229 = tpu.dynamic_rotate %228 by %c239_i32_187 dim 1 : vector<8x256xf32>, i32 -> vector<8x256xf32>
    %230 = vector.broadcast %219 : vector<1x256xf32> to vector<8x256xf32>
    %231 = arith.mulf %229, %230 : vector<8x256xf32>
    %232 = arith.truncf %231 : vector<8x256xf32> to vector<8x256xbf16>
    %c64_188 = arith.constant 64 : index
    %c256_189 = arith.constant 256 : index
    %233 = vector.load %arg8[%c64_188, %c256_189] : memref<72x1024xbf16, #tpu.memory_space<vmem>>, vector<8x256xbf16>
    tpu.vector_store %arg8[%c64_188, %c256_189], %232 {strides = array<i32>} : memref<72x1024xbf16, #tpu.memory_space<vmem>>, vector<8x256xbf16>,
    %c2_190 = arith.constant 2 : index
    %c0_191 = arith.constant 0 : index
    %c0_192 = arith.constant 0 : index
    %234 = vector.load %arg1[%c2_190, %c0_191, %c0_192] : memref<4x8x256xf32, #tpu.memory_space<vmem>>, vector<1x8x256xf32>
    %235 = vector.shape_cast %234 : vector<1x8x256xf32> to vector<8x256xf32>
    %c239_i32_193 = arith.constant 239 : i32
    %236 = tpu.dynamic_rotate %235 by %c239_i32_193 dim 1 : vector<8x256xf32>, i32 -> vector<8x256xf32>
    %237 = vector.broadcast %219 : vector<1x256xf32> to vector<8x256xf32>
    %238 = arith.mulf %236, %237 : vector<8x256xf32>
    %239 = arith.truncf %238 : vector<8x256xf32> to vector<8x256xbf16>
    %c64_194 = arith.constant 64 : index
    %c512_195 = arith.constant 512 : index
    %240 = vector.load %arg8[%c64_194, %c512_195] : memref<72x1024xbf16, #tpu.memory_space<vmem>>, vector<8x256xbf16>
    tpu.vector_store %arg8[%c64_194, %c512_195], %239 {strides = array<i32>} : memref<72x1024xbf16, #tpu.memory_space<vmem>>, vector<8x256xbf16>,
    %c3_196 = arith.constant 3 : index
    %c0_197 = arith.constant 0 : index
    %c0_198 = arith.constant 0 : index
    %241 = vector.load %arg1[%c3_196, %c0_197, %c0_198] : memref<4x8x256xf32, #tpu.memory_space<vmem>>, vector<1x8x256xf32>
    %242 = vector.shape_cast %241 : vector<1x8x256xf32> to vector<8x256xf32>
    %c239_i32_199 = arith.constant 239 : i32
    %243 = tpu.dynamic_rotate %242 by %c239_i32_199 dim 1 : vector<8x256xf32>, i32 -> vector<8x256xf32>
    %244 = vector.broadcast %219 : vector<1x256xf32> to vector<8x256xf32>
    %245 = arith.mulf %243, %244 : vector<8x256xf32>
    %246 = arith.truncf %245 : vector<8x256xf32> to vector<8x256xbf16>
    %c64_200 = arith.constant 64 : index
    %c768_201 = arith.constant 768 : index
    %247 = vector.load %arg8[%c64_200, %c768_201] : memref<72x1024xbf16, #tpu.memory_space<vmem>>, vector<8x256xbf16>
    tpu.vector_store %arg8[%c64_200, %c768_201], %246 {strides = array<i32>} : memref<72x1024xbf16, #tpu.memory_space<vmem>>, vector<8x256xbf16>,
    %c0_202 = arith.constant 0 : index
    %c0_203 = arith.constant 0 : index
    %248 = vector.load %arg3[%c0_202, %c0_203] : memref<8x72xbf16, #tpu.memory_space<vmem>>, vector<8x72xbf16>
    %c0_204 = arith.constant 0 : index
    %c0_205 = arith.constant 0 : index
    %249 = vector.load %arg8[%c0_204, %c0_205] : memref<72x1024xbf16, #tpu.memory_space<vmem>>, vector<72x1024xbf16>
    %cst = arith.constant dense<0.000000e+00> : vector<8x1024xf32>
    %250 = tpu.matmul %248, %249, %cst {dimension_numbers = #tpu.dot_dimension_numbers<[1], [0], [0], [1], [0, 0, 1, 1], [], []>} : vector<8x72xbf16>, vector<72x1024xbf16>, vector<8x1024xf32> -> vector<8x1024xf32>
    %c0_206 = arith.constant 0 : index
    %c0_207 = arith.constant 0 : index
    %251 = vector.load %arg5[%c0_206, %c0_207] : memref<8x1xf32, #tpu.memory_space<vmem>>, vector<8x1xf32>
    %252 = vector.broadcast %251 : vector<8x1xf32> to vector<8x1024xf32>
    %253 = arith.addf %250, %252 : vector<8x1024xf32>
    %254 = math.absf %253 : vector<8x1024xf32>
    %cst_208 = arith.constant 0.000000e+00 : f32
    %255 = vector.broadcast %cst_208 : f32 to vector<8x1024xf32>
    %256 = arith.subf %255, %254 : vector<8x1024xf32>
    %257 = math.exp %256 : vector<8x1024xf32>
    %cst_209 = arith.constant 1.000000e+00 : f32
    %258 = vector.broadcast %cst_209 : f32 to vector<8x1024xf32>
    %259 = arith.subf %257, %258 : vector<8x1024xf32>
    %cst_210 = arith.constant 0.000000e+00 : f32
    %260 = vector.broadcast %cst_210 : f32 to vector<8x1024xf32>
    %261 = arith.cmpf ogt, %253, %260 : vector<8x1024xf32>
    %262 = arith.select %261, %253, %259 : vector<8x1024xi1>, vector<8x1024xf32>
    %cst_211 = arith.constant 0.000000e+00 : f32
    %263 = vector.broadcast %cst_211 : f32 to vector<8x1024xf32>
    %264 = arith.subf %263, %253 : vector<8x1024xf32>
    %265 = arith.select %261, %259, %264 : vector<8x1024xi1>, vector<8x1024xf32>
    %266 = tpu.concatenate %262, %265 in 0 : vector<8x1024xf32>, vector<8x1024xf32> -> vector<16x1024xf32>
    %267 = arith.truncf %266 : vector<16x1024xf32> to vector<16x1024xbf16>
    %c0_212 = arith.constant 0 : index
    %c0_213 = arith.constant 0 : index
    %268 = vector.load %arg4[%c0_212, %c0_213] : memref<8x16xbf16, #tpu.memory_space<vmem>>, vector<8x16xbf16>
    %cst_214 = arith.constant dense<0.000000e+00> : vector<8x1024xf32>
    %269 = tpu.matmul %268, %267, %cst_214 {dimension_numbers = #tpu.dot_dimension_numbers<[1], [0], [0], [1], [0, 0, 1, 1], [], []>} : vector<8x16xbf16>, vector<16x1024xbf16>, vector<8x1024xf32> -> vector<8x1024xf32>
    %c0_215 = arith.constant 0 : index
    %c0_216 = arith.constant 0 : index
    %270 = vector.load %arg6[%c0_215, %c0_216] : memref<8x1xf32, #tpu.memory_space<vmem>>, vector<8x1xf32>
    %271 = vector.broadcast %270 : vector<8x1xf32> to vector<8x1024xf32>
    %272 = arith.addf %269, %271 : vector<8x1024xf32>
    %273 = vector.extract_strided_slice %272 {offsets = [0, 0], sizes = [4, 256], strides = [1, 1]} : vector<8x1024xf32> to vector<4x256xf32>
    %274 = vector.extract_strided_slice %272 {offsets = [4, 0], sizes = [4, 256], strides = [1, 1]} : vector<8x1024xf32> to vector<4x256xf32>
    %c0_217 = arith.constant 0 : index
    %c0_218 = arith.constant 0 : index
    %c0_219 = arith.constant 0 : index
    %275 = vector.load %arg1[%c0_217, %c0_218, %c0_219] : memref<4x8x256xf32, #tpu.memory_space<vmem>>, vector<1x8x256xf32>
    %276 = vector.shape_cast %275 : vector<1x8x256xf32> to vector<8x256xf32>
    %277 = vector.extract_strided_slice %276 {offsets = [0, 0], sizes = [4, 256], strides = [1, 1]} : vector<8x256xf32> to vector<4x256xf32>
    %278 = arith.negf %274 : vector<4x256xf32>
    %279 = math.exp %278 : vector<4x256xf32>
    %cst_220 = arith.constant 1.000000e+00 : f32
    %280 = vector.broadcast %cst_220 : f32 to vector<4x256xf32>
    %281 = arith.addf %280, %279 : vector<4x256xf32>
    %282 = arith.divf %280, %281 : vector<4x256xf32>
    %283 = arith.mulf %273, %282 : vector<4x256xf32>
    %284 = arith.addf %277, %283 : vector<4x256xf32>
    %c0_221 = arith.constant 0 : index
    %c0_222 = arith.constant 0 : index
    %c0_223 = arith.constant 0 : index
    %285 = vector.load %arg7[%c0_221, %c0_222, %c0_223] : memref<4x4x256xf32, #tpu.memory_space<vmem>>, vector<1x4x256xf32>
    %286 = vector.shape_cast %285 : vector<1x4x256xf32> to vector<4x256xf32>
    %287 = vector.shape_cast %284 : vector<4x256xf32> to vector<1x4x256xf32>
    tpu.vector_store %arg7[%c0_221, %c0_222, %c0_223], %287 {strides = array<i32>} : memref<4x4x256xf32, #tpu.memory_space<vmem>>, vector<1x4x256xf32>,
    %288 = vector.extract_strided_slice %272 {offsets = [0, 256], sizes = [4, 256], strides = [1, 1]} : vector<8x1024xf32> to vector<4x256xf32>
    %289 = vector.extract_strided_slice %272 {offsets = [4, 256], sizes = [4, 256], strides = [1, 1]} : vector<8x1024xf32> to vector<4x256xf32>
    %c1_224 = arith.constant 1 : index
    %c0_225 = arith.constant 0 : index
    %c0_226 = arith.constant 0 : index
    %290 = vector.load %arg1[%c1_224, %c0_225, %c0_226] : memref<4x8x256xf32, #tpu.memory_space<vmem>>, vector<1x8x256xf32>
    %291 = vector.shape_cast %290 : vector<1x8x256xf32> to vector<8x256xf32>
    %292 = vector.extract_strided_slice %291 {offsets = [0, 0], sizes = [4, 256], strides = [1, 1]} : vector<8x256xf32> to vector<4x256xf32>
    %293 = arith.negf %289 : vector<4x256xf32>
    %294 = math.exp %293 : vector<4x256xf32>
    %cst_227 = arith.constant 1.000000e+00 : f32
    %295 = vector.broadcast %cst_227 : f32 to vector<4x256xf32>
    %296 = arith.addf %295, %294 : vector<4x256xf32>
    %297 = arith.divf %295, %296 : vector<4x256xf32>
    %298 = arith.mulf %288, %297 : vector<4x256xf32>
    %299 = arith.addf %292, %298 : vector<4x256xf32>
    %c1_228 = arith.constant 1 : index
    %c0_229 = arith.constant 0 : index
    %c0_230 = arith.constant 0 : index
    %300 = vector.load %arg7[%c1_228, %c0_229, %c0_230] : memref<4x4x256xf32, #tpu.memory_space<vmem>>, vector<1x4x256xf32>
    %301 = vector.shape_cast %300 : vector<1x4x256xf32> to vector<4x256xf32>
    %302 = vector.shape_cast %299 : vector<4x256xf32> to vector<1x4x256xf32>
    tpu.vector_store %arg7[%c1_228, %c0_229, %c0_230], %302 {strides = array<i32>} : memref<4x4x256xf32, #tpu.memory_space<vmem>>, vector<1x4x256xf32>,
    %303 = vector.extract_strided_slice %272 {offsets = [0, 512], sizes = [4, 256], strides = [1, 1]} : vector<8x1024xf32> to vector<4x256xf32>
    %304 = vector.extract_strided_slice %272 {offsets = [4, 512], sizes = [4, 256], strides = [1, 1]} : vector<8x1024xf32> to vector<4x256xf32>
    %c2_231 = arith.constant 2 : index
    %c0_232 = arith.constant 0 : index
    %c0_233 = arith.constant 0 : index
    %305 = vector.load %arg1[%c2_231, %c0_232, %c0_233] : memref<4x8x256xf32, #tpu.memory_space<vmem>>, vector<1x8x256xf32>
    %306 = vector.shape_cast %305 : vector<1x8x256xf32> to vector<8x256xf32>
    %307 = vector.extract_strided_slice %306 {offsets = [0, 0], sizes = [4, 256], strides = [1, 1]} : vector<8x256xf32> to vector<4x256xf32>
    %308 = arith.negf %304 : vector<4x256xf32>
    %309 = math.exp %308 : vector<4x256xf32>
    %cst_234 = arith.constant 1.000000e+00 : f32
    %310 = vector.broadcast %cst_234 : f32 to vector<4x256xf32>
    %311 = arith.addf %310, %309 : vector<4x256xf32>
    %312 = arith.divf %310, %311 : vector<4x256xf32>
    %313 = arith.mulf %303, %312 : vector<4x256xf32>
    %314 = arith.addf %307, %313 : vector<4x256xf32>
    %c2_235 = arith.constant 2 : index
    %c0_236 = arith.constant 0 : index
    %c0_237 = arith.constant 0 : index
    %315 = vector.load %arg7[%c2_235, %c0_236, %c0_237] : memref<4x4x256xf32, #tpu.memory_space<vmem>>, vector<1x4x256xf32>
    %316 = vector.shape_cast %315 : vector<1x4x256xf32> to vector<4x256xf32>
    %317 = vector.shape_cast %314 : vector<4x256xf32> to vector<1x4x256xf32>
    tpu.vector_store %arg7[%c2_235, %c0_236, %c0_237], %317 {strides = array<i32>} : memref<4x4x256xf32, #tpu.memory_space<vmem>>, vector<1x4x256xf32>,
    %318 = vector.extract_strided_slice %272 {offsets = [0, 768], sizes = [4, 256], strides = [1, 1]} : vector<8x1024xf32> to vector<4x256xf32>
    %319 = vector.extract_strided_slice %272 {offsets = [4, 768], sizes = [4, 256], strides = [1, 1]} : vector<8x1024xf32> to vector<4x256xf32>
    %c3_238 = arith.constant 3 : index
    %c0_239 = arith.constant 0 : index
    %c0_240 = arith.constant 0 : index
    %320 = vector.load %arg1[%c3_238, %c0_239, %c0_240] : memref<4x8x256xf32, #tpu.memory_space<vmem>>, vector<1x8x256xf32>
    %321 = vector.shape_cast %320 : vector<1x8x256xf32> to vector<8x256xf32>
    %322 = vector.extract_strided_slice %321 {offsets = [0, 0], sizes = [4, 256], strides = [1, 1]} : vector<8x256xf32> to vector<4x256xf32>
    %323 = arith.negf %319 : vector<4x256xf32>
    %324 = math.exp %323 : vector<4x256xf32>
    %cst_241 = arith.constant 1.000000e+00 : f32
    %325 = vector.broadcast %cst_241 : f32 to vector<4x256xf32>
    %326 = arith.addf %325, %324 : vector<4x256xf32>
    %327 = arith.divf %325, %326 : vector<4x256xf32>
    %328 = arith.mulf %318, %327 : vector<4x256xf32>
    %329 = arith.addf %322, %328 : vector<4x256xf32>
    %c3_242 = arith.constant 3 : index
    %c0_243 = arith.constant 0 : index
    %c0_244 = arith.constant 0 : index
    %330 = vector.load %arg7[%c3_242, %c0_243, %c0_244] : memref<4x4x256xf32, #tpu.memory_space<vmem>>, vector<1x4x256xf32>
    %331 = vector.shape_cast %330 : vector<1x4x256xf32> to vector<4x256xf32>
    %332 = vector.shape_cast %329 : vector<4x256xf32> to vector<1x4x256xf32>
    tpu.vector_store %arg7[%c3_242, %c0_243, %c0_244], %332 {strides = array<i32>} : memref<4x4x256xf32, #tpu.memory_space<vmem>>, vector<1x4x256xf32>,
    return
  }
  func.func @transform_0(%arg0: i32) -> (i32, i32, i32) {
    %c0_i32 = arith.constant 0 : i32
    %c0_i32_0 = arith.constant 0 : i32
    %c0_i32_1 = arith.constant 0 : i32
    return %arg0, %c0_i32, %c0_i32_0 : i32, i32, i32
  }
  func.func @transform_1(%arg0: i32) -> (i32, i32) {
    %c0_i32 = arith.constant 0 : i32
    %c0_i32_0 = arith.constant 0 : i32
    %c0_i32_1 = arith.constant 0 : i32
    return %c0_i32, %c0_i32_0 : i32, i32
  }
  func.func @transform_2(%arg0: i32) -> (i32, i32) {
    %c0_i32 = arith.constant 0 : i32
    %c0_i32_0 = arith.constant 0 : i32
    %c0_i32_1 = arith.constant 0 : i32
    return %c0_i32, %c0_i32_0 : i32, i32
  }
  func.func @transform_3(%arg0: i32) -> (i32, i32) {
    %c0_i32 = arith.constant 0 : i32
    %c0_i32_0 = arith.constant 0 : i32
    %c0_i32_1 = arith.constant 0 : i32
    return %c0_i32, %c0_i32_0 : i32, i32
  }
  func.func @transform_4(%arg0: i32) -> (i32, i32) {
    %c0_i32 = arith.constant 0 : i32
    %c0_i32_0 = arith.constant 0 : i32
    %c0_i32_1 = arith.constant 0 : i32
    return %c0_i32, %c0_i32_0 : i32, i32
  }
  func.func @transform_5(%arg0: i32) -> (i32, i32) {
    %c0_i32 = arith.constant 0 : i32
    %c0_i32_0 = arith.constant 0 : i32
    %c0_i32_1 = arith.constant 0 : i32
    return %c0_i32, %c0_i32_0 : i32, i32
  }
  func.func @transform_6(%arg0: i32) -> (i32, i32, i32) {
    %c0_i32 = arith.constant 0 : i32
    %c0_i32_0 = arith.constant 0 : i32
    %c0_i32_1 = arith.constant 0 : i32
    return %arg0, %c0_i32, %c0_i32_0 : i32, i32, i32
  }
}

</mosaic_0001>

<bundles_post_ra>
// kernel: tpu_custom_call.1
= control target key start
LH: loop header
LB: loop body
LE: loop exit
PB: predicated region body
PF: predicated region fallthrough
CT: control target
= control target key end

     0   :  { %11 = vsyncpa [#allocation4], 0  ;;  %s3220_s0 = inlined_call_operand.hbm [shape: f32[8,8,256], index: 0, kind: input, shape index: {}]   ;;  %s3221_s1 = inlined_call_operand.hbm [shape: f32[9,256], index: 1, kind: input, shape index: {}]   ;;  %s3222_s2 = inlined_call_operand.vmem [shape: bf16[8,72], index: 2, kind: input, shape index: {}]   ;;  %s3223_s3 = inlined_call_operand.vmem [shape: bf16[8,16], index: 3, kind: input, shape index: {}]   ;;  %s3224_s4 = inlined_call_operand.vmem [shape: f32[8,1], index: 4, kind: input, shape index: {}]   ;;  %s3225_s5 = inlined_call_operand.vmem [shape: f32[8,1], index: 5, kind: input, shape index: {}]   ;;  %s3226_s6 = inlined_call_operand.hbm [shape: f32[8,4,256], index: 6, kind: output, shape index: {}]  }
   0x1   :  { %13 = vsyncpa [#allocation4 + $0x1], 0 }
   0x2   :  { %14 = vsyncpa [#allocation7], 0 }
   0x3   :  { %15 = vsyncpa [#allocation5], 0 }
   0x4   :  { %17 = vsyncpa [#allocation5 + $0x1], 0  ;;  %s2511_s21 = smov 0   ;;  %s2513_s22 = smov 0  }
   0x5   :  { %s2515_s23 = smov 0   ;;  %s2517_s24 = smov 0  }
   0x6 LB: > { %s2532_s25 = sadd.s32 4294967295, %s2458_s24   ;;  %s1945_s26 = sadd.s32 4294967294, %s2458_s24   ;;  %s2458_s24 = sphi %s2517_s24, %s3246_s24   ;;  %s2454_s23 = sphi %s2515_s23, %s3245_s23   ;;  %s2450_s22 = sphi %s2513_s22, %s3244_s22   ;;  %s2446_s21 = sphi %s2511_s21, %s3243_s21  }
   0x7   : > { %p43_p0 = scmp.ne.s32.totalorder %s2450_s22, %s2446_s21  ;;  %p3227_p1 = scmp.eq.s32.totalorder %s2532_s25, 0 }
   0x8   : > { %p178_p3 = scmp.eq.s32.totalorder %s1945_s26, 1  ;;  %p1946_p5 = scmp.ge.s32.totalorder %s2458_s24, 1 }
   0x9   : > { %p2541_p4 = por %p3227_p1, %p43_p0  ;;  %p185_p7 = scmp.lt.s32.totalorder %s2458_s24, 3 }
   0xa   : > { %p2546_p6 = por %p178_p3, %p43_p0  ;;  %s2460_s30 = smov [#allocation6]  }
   0xb   : > { %s3230_s27 = scalar_select %p2541_p4, 1, 0 }
   0xc   : > { %s3231_s28 = scalar_select %p2546_p6, 1, 0 }
   0xd   : > { %p2551_p8 = pnand %p1946_p5, %p185_p7  ;;  %s197_s7 = sshll.u32 %s2460_s30, 4  ;;  %s2555_s7 = int_to_ptr.vmem [resolvable:$true] %s197_s7 }
   0xe   : > { %s2567_s9 = sadd.s32 1, %s2458_s24   ;;  %s30_s10 = sadd.s32 1, %s2454_s23 }
   0xf   : > { %s3232_s29 = scalar_select %p2551_p8, 1, 0 }
  0x10   : > { %p2218_p9 = pneg %p2551_p8  ;;  %s27_s11 = ssub.s32 %s2458_s24, %s2567_s9 }
  0x11   : > { %s2330_s14 = scalar_lea.hbm %s3221_s1, 512 }
  0x12   : > { %p2562_p11 = pnand %p2218_p9, %p3227_p1  ;;  %p2331_p12 = scmp.ne.s32.totalorder %s3221_s1, %s2330_s14 }
  0x13   : > { %p2337_p5 = scmp.lt.u32.totalorder %s2330_s14, %s3221_s1 }
  0x14   : > { %p2332_p13 = pneg %p2562_p11 }
  0x16   : > { %p2333_p0 = pnand %p2332_p13, %p2331_p12 }
  0x18   : > { %p2334_p3 = pneg %p2333_p0 }
  0x1a   : > { %p2339_p7 = pnand %p2337_p5, %p2334_p3 }
  0x1c   : > { %2342 = shalt.err (!%p2339_p7)
}
  0x1d   : > { %s2343_s19 = scalar_lea.vmem %s2555_s7, 512  ;;  %p2351_p2 = scmp.lt.s32.totalorder %s2555_s7, %s2555_s7 }
  0x1e   : > { %p2344_p9 = scmp.ne.s32.totalorder %s2555_s7, %s2343_s19  ;;  %p2352_p6 = scmp.lt.s32.totalorder %s2343_s19, %s2343_s19 }
  0x20   : > { %p2346_p10 = pnand %p2344_p9, %p2332_p13  ;;  %p2353_p4 = por %p2352_p6, %p2351_p2 }
  0x22   : > { %p2347_p1 = pneg %p2346_p10 }
  0x24   : > { %p2354_p8 = pnand %p2353_p4, %p2347_p1 }
  0x26   : > { %2357 = shalt.err (!%p2354_p8)
}
  0x27   : > { %s2461_s20 = smov 256   ;;  %s2462_s26 = smov 16  }
  0x28   : > { %2221 = dma.hbm_to_vmem [thread:$0]  (!%p2562_p11), %s3221_s1, 512, %s2555_s7, [#allocation7], %s2461_s20, %s2461_s20, %s2462_s26  }
  0x29   : > { %p28_p1 = scmp.eq.s32.totalorder %s27_s11, 0  ;;  %p37_p2 = scmp.ne.s32.totalorder %s2454_s23, %s2450_s22 }
  0x2a   : > { %p38_p4 = scmp.eq.s32.totalorder %s2458_s24, 0  ;;  %p2231_p6 = scmp.lt.s32.totalorder %s2458_s24, 2 }
  0x2b   : > { %s2601_s13 = scalar_select %p28_p1, %s2454_s23, %s30_s10  }
  0x2c   : > { %p39_p8 = por %p38_p4, %p37_p2  ;;  %p3234_p10 = scmp.eq.s32.totalorder %s2532_s25, 1 }
  0x2d   : > { %s223_s8 = sand.u32 1, %s2454_s23   ;;  %s2131_s15 = sshll.u32 %s2458_s24, 10 }
  0x2e   : > { %p2605_p12 = por %p3234_p10, %p37_p2  ;;  %s1949_s16 = sshll.u32 %s223_s8, 6 }
  0x2f   : > { %s2614_s19 = scalar_lea.hbm %s3220_s0, %s2131_s15  ;;  %s227_s7 = scalar_lea.vmem [#allocation3], %s1949_s16 }
  0x30   : > { %s235_s10 = sshll.u32 %s227_s7, 4  ;;  %p2616_p11 = pnand %p2231_p6, %p39_p8  ;;  %s2620_s10 = int_to_ptr.vmem [resolvable:$true] %s235_s10 }
  0x31   : > { %s2622_s30 = scalar_lea.sflag [#allocation4], %s223_s8  ;;  %s2358_s12 = scalar_lea.hbm %s2614_s19, 1024 }
  0x32   : > { %p2359_p13 = scmp.ne.s32.totalorder %s2614_s19, %s2358_s12  ;;  %p2360_p0 = pneg %p2616_p11 }
  0x33   : > { %s2363_s17 = scalar_lea.hbm %s3220_s0, 2048  ;;  %p2364_p7 = scmp.lt.u32.totalorder %s2614_s19, %s3220_s0 }
  0x34   : > { %p2361_p3 = pnand %p2360_p0, %p2359_p13  ;;  %p2365_p9 = scmp.lt.u32.totalorder %s2363_s17, %s2358_s12 }
  0x35   : > { %p2367_p2 = scmp.lt.u32.totalorder %s2358_s12, %s2614_s19 }
  0x36   : > { %p2362_p5 = pneg %p2361_p3  ;;  %p2366_p1 = por %p2365_p9, %p2364_p7 }
  0x38   : > { %p2368_p4 = por %p2367_p2, %p2366_p1 }
  0x3a   : > { %p2369_p6 = pnand %p2368_p4, %p2362_p5 }
  0x3c   : > { %2372 = shalt.err (!%p2369_p6)
}
  0x3d   : > { %s2373_s8 = scalar_lea.vmem %s2620_s10, 1024  ;;  %s2463_s15 = smov [#allocation3]  }
  0x3e   : > { %p2374_p8 = scmp.ne.s32.totalorder %s2620_s10, %s2373_s8  ;;  %s2378_s16 = sshll.u32 %s2463_s15, 4  ;;  %s2379_s16 = int_to_ptr.vmem [resolvable:$false] %s2378_s16 }
  0x3f   : > { %s2380_s18 = scalar_lea.vmem %s2379_s16, 2048  ;;  %p2381_p3 = scmp.lt.s32.totalorder %s2620_s10, %s2379_s16 }
  0x40   : > { %p2376_p10 = pnand %p2374_p8, %p2360_p0  ;;  %p2382_p7 = scmp.lt.s32.totalorder %s2380_s18, %s2373_s8 }
  0x42   : > { %p2377_p13 = pneg %p2376_p10  ;;  %p2383_p9 = por %p2382_p7, %p2381_p3 }
  0x44   : > { %p2384_p1 = pnand %p2383_p9, %p2377_p13 }
  0x46   : > { %2387 = shalt.err (!%p2384_p1)
}
  0x47   : > { %2225 = dma.hbm_to_vmem [thread:$0]  (!%p2616_p11), %s2614_s19, 1024, %s2620_s10, %s2622_s30, %s2461_s20, %s2461_s20, %s2462_s26  }
  0x48   : > { %p3237_p0 = scmp.ne.s32.totalorder %s3232_s29, 0 }
  0x49   : > { %s2656_s12 = sand.u32 (!%p3237_p0), 1, %s2450_s22   ;;  %p3238_p5 = scmp.ne.s32.totalorder (!%p3237_p0), %s3230_s27, 0 }
  0x4a   : > { %247 = sbr.rel (%p3237_p0) target bundleno = 839 (0x347), region = 44  ;;  %s1954_s17 = sshll.u32 (!%p3237_p0), %s2656_s12, 6 }
  0x4b   : > { %s250_s7 = scalar_lea.sflag (!%p3237_p0), [#allocation4], %s2656_s12  ;;  %s2660_s8 = scalar_lea.vmem (!%p3237_p0), [#allocation3], %s1954_s17 }
  0x51   : > { %2433 = dma.done.wait (%p3238_p5), %s250_s7, 1024  }
  0x52   : > { %2435 = vsyncadd (%p3238_p5), %s250_s7, 4294966272  ;;  %p3239_p11 = scmp.eq.s32.totalorder %s2532_s25, 0 }
  0x54   : > { %2437 = dma.done.wait (%p3239_p11), [#allocation7], 512   ;;  %p3240_p2 = pmov %p3239_p11 }
  0x55   : > { %v2671_v0 = vld [vmem:[%s2660_s8 + $0x10] sm:$0xff]  ;;  %v2674_v1 = vld [vmem:[%s2660_s8] sm:$0xff]  ;;  %s2464_s29 = smov 17   ;;  %v2681_v2 = vld [vmem:[%s2660_s8 + $0x18] sm:$0xff]  ;;  %s2465_s27 = smov 16   ;;  %v2472_v8 = vmov 0   ;;  %v296_v9 = vlaneseq }
  0x56   : > { %2439 = vsyncadd (%p3240_p2), [#allocation7], 4294966784  ;;  %326 = vrot.lane.b32.xlu1 %v2671_v0, %s2464_s29  ;;  %292 = vrot.lane.b32.xlu0 %v2674_v1, %s2464_s29  ;;  %v2684_v3 = vld [vmem:[%s2660_s8 + $0x8] sm:$0xff]  ;;  %s2466_s20 = smov 15   ;;  %s2467_s26 = smov 1   ;;  %v2750_v5 = vld [vmem:[%s2660_s8 + $0x20] sm:$0xff] }
  0x57   : > { %s2468_s19 = smov 127   ;;  %s2469_s10 = smov 113   ;;  %v2747_v4 = vld [vmem:[%s2660_s8 + $0x28] sm:$0xff]  ;;  %v2757_v6 = vld [vmem:[%s2660_s8 + $0x38] sm:$0xff]  ;;  %v2760_v7 = vld [vmem:[%s2660_s8 + $0x30] sm:$0xff]  ;;  %1341 = vmatprep.mubr.bf16.mxu0 %v2472_v8  ;;  %1382 = vmatprep.mubr.bf16.mxu1 %v2472_v8  ;;  %v303_v10 = vshrl.u32 %v296_v9, 7 }
  0x58   : > { %s2470_s11 = smov 112   ;;  %s2471_s30 = smov 111   ;;  %2280 = vset.pattern.permute.xlu0 %v2472_v8  ;;  %2281 = vset.pattern.permute.xlu1 %v2472_v8  ;;  %v2814_v11 = vand.u32 127, %v296_v9  ;;  %v289_v16 = vld [vmem:[#allocation6] ss:$8 sm:$0x3] }
  0x59   : > { %v2816_v14 = vsub.s32 0, %v303_v10  ;;  %v2818_v15 = vsub.s32 1, %v303_v10  ;;  %v384_v17 = vld [vmem:[#allocation6 + $0x1] ss:$8 sm:$0x3]  ;;  %vm1284_vm8 = vcmask 1043456  }
  0x5a   : > { %328 = vrot.lane.b32.xlu1 %v2681_v2, %s2464_s29  ;;  %294 = vrot.lane.b32.xlu0 %v2684_v3, %s2464_s29  ;;  %vm298_vm0 = vcmp.lt.s32.totalorder %v2814_v11, 17  ;;  %vm391_vm1 = vcmp.lt.s32.totalorder %v2814_v11, 16  ;;  %v1094_v36 = vld [vmem:[%s3224_s4] sm:$0xff]  ;;  %vm481_vm2 = vcmp.lt.s32.totalorder %v2814_v11, 15  ;;  %vm571_vm3 = vcmp.lt.s32.totalorder %v2814_v11, 1  ;;  %s1848_s18 = scalar_lea.sflag [#allocation5], %s2656_s12 }
  0x5b   : > { %v2826_v20 = vrot.slane %v289_v16, %v2816_v14  ;;  %v2829_v21 = vrot.slane %v289_v16, %v2818_v15  ;;  %v2839_v23 = vrot.slane %v384_v17, %v2816_v14  ;;  %v2842_v24 = vrot.slane %v384_v17, %v2818_v15  ;;  %v474_v51 = vld [vmem:[#allocation6 + $0x2] ss:$8 sm:$0x3]  ;;  %v564_v52 = vld [vmem:[#allocation6 + $0x3] ss:$8 sm:$0x3] }
  0x5c   : > { %v2875_v55 = vrot.slane %v474_v51, %v2816_v14  ;;  %v2878_v56 = vrot.slane %v474_v51, %v2818_v15  ;;  %v2882_v57 = vrot.slane %v564_v52, %v2816_v14  ;;  %v2885_v58 = vrot.slane %v564_v52, %v2818_v15  ;;  %v698_v17 = vld [vmem:[#allocation6 + $0x5] ss:$8 sm:$0x3] }
  0x5d   : > { %vm705_vm4 = vcmp.lt.s32.totalorder %v2814_v11, 127  ;;  %vm795_vm5 = vcmp.lt.s32.totalorder %v2814_v11, 113  ;;  %vm885_vm6 = vcmp.lt.s32.totalorder %v2814_v11, 112  ;;  %vm975_vm7 = vcmp.lt.s32.totalorder %v2814_v11, 111  ;;  %v1554_v11 = vld [vmem:[%s3225_s5] sm:$0xff] }
  0x5e   : > { %389 = vrot.lane.b32.xlu1 %v2684_v3, %s2465_s27  ;;  %387 = vrot.lane.b32.xlu0 %v2674_v1, %s2465_s27  ;;  %vm1280_vm9 = vcmask 588800   ;;  %vm1560_vm14 = vcmask 130048  }
  0x62   : > { %420 = vrot.lane.b32.xlu1 %v2681_v2, %s2465_s27  ;;  %418 = vrot.lane.b32.xlu0 %v2671_v0, %s2465_s27 }
  0x66   : > { %479 = vrot.lane.b32.xlu1 %v2684_v3, %s2466_s20  ;;  %477 = vrot.lane.b32.xlu0 %v2674_v1, %s2466_s20 }
  0x6a   : > { %510 = vrot.lane.b32.xlu1 %v2681_v2, %s2466_s20  ;;  %508 = vrot.lane.b32.xlu0 %v2671_v0, %s2466_s20 }
  0x6e   : > { %569 = vrot.lane.b32.xlu1 %v2684_v3, %s2467_s26  ;;  %567 = vrot.lane.b32.xlu0 %v2674_v1, %s2467_s26 }
  0x72   : > { %600 = vrot.lane.b32.xlu1 %v2681_v2, %s2467_s26  ;;  %598 = vrot.lane.b32.xlu0 %v2671_v0, %s2467_s26 }
  0x76   : > { %703 = vrot.lane.b32.xlu1 %v2684_v3, %s2468_s19  ;;  %701 = vrot.lane.b32.xlu0 %v2674_v1, %s2468_s19 }
  0x7a   : > { %734 = vrot.lane.b32.xlu1 %v2681_v2, %s2468_s19  ;;  %732 = vrot.lane.b32.xlu0 %v2671_v0, %s2468_s19 }
  0x7e   : > { %793 = vrot.lane.b32.xlu1 %v2684_v3, %s2469_s10  ;;  %791 = vrot.lane.b32.xlu0 %v2674_v1, %s2469_s10 }
  0x82   : > { %824 = vrot.lane.b32.xlu1 %v2681_v2, %s2469_s10  ;;  %822 = vrot.lane.b32.xlu0 %v2671_v0, %s2469_s10 }
  0x86   : > { %883 = vrot.lane.b32.xlu1 %v2684_v3, %s2470_s11  ;;  %881 = vrot.lane.b32.xlu0 %v2674_v1, %s2470_s11 }
  0x8a   : > { %914 = vrot.lane.b32.xlu1 %v2681_v2, %s2470_s11  ;;  %912 = vrot.lane.b32.xlu0 %v2671_v0, %s2470_s11 }
  0x8e   : > { %973 = vrot.lane.b32.xlu1 %v2684_v3, %s2471_s30  ;;  %971 = vrot.lane.b32.xlu0 %v2674_v1, %s2471_s30 }
  0x92   : > { %1004 = vrot.lane.b32.xlu1 %v2681_v2, %s2471_s30  ;;  %1002 = vrot.lane.b32.xlu0 %v2671_v0, %s2471_s30 }
  0x96   : > { %348 = vrot.lane.b32.xlu1 %v2747_v4, %s2464_s29  ;;  %346 = vrot.lane.b32.xlu0 %v2750_v5, %s2464_s29 }
  0x9a   : > { %368 = vrot.lane.b32.xlu1 %v2757_v6, %s2464_s29  ;;  %366 = vrot.lane.b32.xlu0 %v2760_v7, %s2464_s29 }
  0x9e   : > { %439 = vrot.lane.b32.xlu1 %v2747_v4, %s2465_s27  ;;  %437 = vrot.lane.b32.xlu0 %v2750_v5, %s2465_s27 }
  0xa2   : > { %458 = vrot.lane.b32.xlu1 %v2757_v6, %s2465_s27  ;;  %456 = vrot.lane.b32.xlu0 %v2760_v7, %s2465_s27 }
  0xa6   : > { %529 = vrot.lane.b32.xlu1 %v2747_v4, %s2466_s20  ;;  %527 = vrot.lane.b32.xlu0 %v2750_v5, %s2466_s20 }
  0xaa   : > { %548 = vrot.lane.b32.xlu1 %v2757_v6, %s2466_s20  ;;  %546 = vrot.lane.b32.xlu0 %v2760_v7, %s2466_s20 }
  0xae   : > { %619 = vrot.lane.b32.xlu1 %v2747_v4, %s2467_s26  ;;  %617 = vrot.lane.b32.xlu0 %v2750_v5, %s2467_s26 }
  0xb2   : > { %638 = vrot.lane.b32.xlu1 %v2757_v6, %s2467_s26  ;;  %636 = vrot.lane.b32.xlu0 %v2760_v7, %s2467_s26  ;;  %s1956_s26 = sshll.u32 %s2656_s12, 5 }
  0xb6   : > { %753 = vrot.lane.b32.xlu1 %v2747_v4, %s2468_s19  ;;  %751 = vrot.lane.b32.xlu0 %v2750_v5, %s2468_s19 }
  0xba   : > { %772 = vrot.lane.b32.xlu1 %v2757_v6, %s2468_s19  ;;  %770 = vrot.lane.b32.xlu0 %v2760_v7, %s2468_s19  ;;  %s3155_s19 = scalar_lea.vmem [#allocation8], %s1956_s26 }
  0xbe   : > { %843 = vrot.lane.b32.xlu1 %v2747_v4, %s2469_s10  ;;  %841 = vrot.lane.b32.xlu0 %v2750_v5, %s2469_s10 }
  0xc2   : > { %862 = vrot.lane.b32.xlu1 %v2757_v6, %s2469_s10  ;;  %860 = vrot.lane.b32.xlu0 %v2760_v7, %s2469_s10  ;;  %s1862_s10 = sshll.u32 %s3155_s19, 4  ;;  %s3169_s10 = int_to_ptr.vmem [resolvable:$true] %s1862_s10 }
  0xc6   : > { %933 = vrot.lane.b32.xlu1 %v2747_v4, %s2470_s11  ;;  %931 = vrot.lane.b32.xlu0 %v2750_v5, %s2470_s11 }
  0xc8   : > { %v327_v12 = vpop.permute.xlu1 %326  ;;  %v293_v13 = vpop.permute.xlu0 %292 }
  0xca   : > { %952 = vrot.lane.b32.xlu1 %v2757_v6, %s2470_s11  ;;  %950 = vrot.lane.b32.xlu0 %v2760_v7, %s2470_s11  ;;  %s2169_s11 = sshll.u32 %s2532_s25, 9  ;;  %s2473_s25 = smov [#allocation8]  }
  0xcb   : > { %s3175_s16 = scalar_lea.hbm %s3226_s6, %s2169_s11  ;;  %s2392_s17 = sshll.u32 %s2473_s25, 4  ;;  %s2393_s17 = int_to_ptr.vmem [resolvable:$false] %s2392_s17 }
  0xcc   : > { %v329_v18 = vpop.permute.xlu1 %328  ;;  %v295_v19 = vpop.permute.xlu0 %294  ;;  %s2394_s7 = scalar_lea.vmem %s2393_s17, 1024  ;;  %p2395_p10 = scmp.lt.s32.totalorder %s3169_s10, %s2393_s17 }
  0xcd   : > { %v300_v22 = vsel %vm298_vm0, %v295_v19, %v293_v13  ;;  %v299_v25 = vsel %vm298_vm0, %v293_v13, %v295_v19  ;;  %v331_v28 = vsel %vm298_vm0, %v329_v18, %v327_v12  ;;  %v330_v35 = vsel %vm298_vm0, %v327_v12, %v329_v18 }
  0xce   : > { %1023 = vrot.lane.b32.xlu1 %v2747_v4, %s2471_s30  ;;  %1021 = vrot.lane.b32.xlu0 %v2750_v5, %s2471_s30  ;;  %v312_v29 = vmul.f32 %v2826_v20, %v300_v22  ;;  %v313_v33 = vmul.f32 %v2829_v21, %v299_v25  ;;  %v332_v41 = vmul.f32 %v331_v28, %v2826_v20 }
  0xcf   : > { %v333_v45 = vmul.f32 %v330_v35, %v2829_v21 }
  0xd0   : > { %v390_v26 = vpop.permute.xlu1 %389  ;;  %v388_v27 = vpop.permute.xlu0 %387 }
  0xd1   : > { %v392_v30 = vsel %vm391_vm1, %v388_v27, %v390_v26  ;;  %v393_v31 = vsel %vm391_vm1, %v390_v26, %v388_v27 }
  0xd2   : > { %v405_v32 = vmul.f32 %v2839_v23, %v393_v31  ;;  %1042 = vrot.lane.b32.xlu1 %v2757_v6, %s2471_s30  ;;  %1040 = vrot.lane.b32.xlu0 %v2760_v7, %s2471_s30  ;;  %v406_v34 = vmul.f32 %v2842_v24, %v392_v30  ;;  %v2909_v30 = vrot.slane %v698_v17, %v2816_v14 }
  0xd3   : > { %v2912_v31 = vrot.slane %v698_v17, %v2818_v15 }
  0xd4   : > { %v421_v37 = vpop.permute.xlu1 %420  ;;  %v419_v38 = vpop.permute.xlu0 %418  ;;  %v2171_v39 = vpack.c.bf16 %v406_v34, %v313_v33  ;;  %v2170_v40 = vpack.c.bf16 %v405_v32, %v312_v29 }
  0xd5   : > { %v422_v42 = vsel %vm391_vm1, %v419_v38, %v421_v37  ;;  %v423_v43 = vsel %vm391_vm1, %v421_v37, %v419_v38 }
  0xd6   : > { %v424_v44 = vmul.f32 %v423_v43, %v2839_v23  ;;  %1309 = vmatprep.subr.bf16.mxu0 %v2171_v39  ;;  %v425_v46 = vmul.f32 %v422_v42, %v2842_v24  ;;  %1097 = vperm.xlu0 %2280, %v1094_v36  }
  0xd7   : > { %1310 = vmatpush1.bf16.msra.mxu0 %v2170_v40  ;;  %1557 = vperm.xlu1 %2281, %v1554_v11  }
  0xd8   : > { %v480_v47 = vpop.permute.xlu1 %479  ;;  %v478_v48 = vpop.permute.xlu0 %477  ;;  %v2173_v49 = vpack.c.bf16 %v425_v46, %v333_v45  ;;  %v2172_v50 = vpack.c.bf16 %v424_v44, %v332_v41 }
  0xd9   : > { %v482_v59 = vsel %vm481_vm2, %v478_v48, %v480_v47  ;;  %v483_v60 = vsel %vm481_vm2, %v480_v47, %v478_v48 }
  0xda   : > { %1350 = vmatprep.subr.bf16.mxu1 %v2173_v49  ;;  %v495_v10 = vmul.f32 %v2875_v55, %v483_v60  ;;  %v496_v12 = vmul.f32 %v2878_v56, %v482_v59  ;;  %v788_v59 = vld [vmem:[#allocation6 + $0x6] ss:$8 sm:$0x3] }
  0xdb   : > { %1351 = vmatpush1.bf16.msra.mxu1 %v2172_v50 }
  0xdc   : > { %v511_v53 = vpop.permute.xlu1 %510  ;;  %v509_v54 = vpop.permute.xlu0 %508 }
  0xdd   : > { %v512_v18 = vsel %vm481_vm2, %v509_v54, %v511_v53  ;;  %v513_v19 = vsel %vm481_vm2, %v511_v53, %v509_v54 }
  0xde   : > { %v514_v32 = vmul.f32 %v513_v19, %v2875_v55  ;;  %v515_v33 = vmul.f32 %v512_v18, %v2878_v56 }
  0xe0   : > { %v570_v61 = vpop.permute.xlu1 %569  ;;  %v568_v62 = vpop.permute.xlu0 %567 }
  0xe1   : > { %v572_v63 = vsel %vm571_vm3, %v568_v62, %v570_v61  ;;  %v573_v9 = vsel %vm571_vm3, %v570_v61, %v568_v62  ;;  %v2936_v62 = vrot.slane %v788_v59, %v2816_v14 }
  0xe2   : > { %v585_v13 = vmul.f32 %v2882_v57, %v573_v9  ;;  %v586_v16 = vmul.f32 %v2885_v58, %v572_v63  ;;  %v2939_v63 = vrot.slane %v788_v59, %v2818_v15 }
  0xe4   : > { %v601_v22 = vpop.permute.xlu1 %600  ;;  %v599_v25 = vpop.permute.xlu0 %598  ;;  %v2179_v26 = vpack.c.bf16 %v586_v16, %v496_v12  ;;  %v2178_v27 = vpack.c.bf16 %v585_v13, %v495_v10 }
  0xe5   : > { %v602_v28 = vsel %vm571_vm3, %v599_v25, %v601_v22  ;;  %v603_v29 = vsel %vm571_vm3, %v601_v22, %v599_v25 }
  0xe6   : > { %v604_v34 = vmul.f32 %v603_v29, %v2882_v57  ;;  %v605_v35 = vmul.f32 %v602_v28, %v2885_v58  ;;  %1311 = vmatprep.subr.bf16.mxu0 %v2179_v26  ;;  %v968_v26 = vld [vmem:[#allocation6 + $0x10] ss:$8 sm:$0x3] }
  0xe7   : > { %1312 = vmatpush1.bf16.msra.mxu0 %v2178_v27 }
  0xe8   : > { %v704_v36 = vpop.permute.xlu1 %703  ;;  %v702_v37 = vpop.permute.xlu0 %701  ;;  %v2181_v38 = vpack.c.bf16 %v605_v35, %v515_v33  ;;  %v2180_v39 = vpack.c.bf16 %v604_v34, %v514_v32 }
  0xe9   : > { %v706_v40 = vsel %vm705_vm4, %v702_v37, %v704_v36  ;;  %v707_v41 = vsel %vm705_vm4, %v704_v36, %v702_v37  ;;  %v2970_v37 = vrot.slane %v968_v26, %v2816_v14 }
  0xea   : > { %v719_v42 = vmul.f32 %v2909_v30, %v706_v40  ;;  %v720_v43 = vmul.f32 %v2912_v31, %v707_v41  ;;  %1352 = vmatprep.subr.bf16.mxu1 %v2181_v38  ;;  %v2973_v38 = vrot.slane %v968_v26, %v2818_v15 }
  0xeb   : > { %1353 = vmatpush1.bf16.msra.mxu1 %v2180_v39 }
  0xec   : > { %v735_v44 = vpop.permute.xlu1 %734  ;;  %v733_v45 = vpop.permute.xlu0 %732  ;;  %v2187_v46 = vpack.c.bf16 %v720_v43, %v2684_v3  ;;  %v2186_v47 = vpack.c.bf16 %v719_v42, %v2674_v1  ;;  %v878_v1 = vld [vmem:[#allocation6 + $0x7] ss:$8 sm:$0x3] }
  0xed   : > { %v736_v48 = vsel %vm705_vm4, %v733_v45, %v735_v44  ;;  %v737_v49 = vsel %vm705_vm4, %v735_v44, %v733_v45 }
  0xee   : > { %v738_v50 = vmul.f32 %v736_v48, %v2909_v30  ;;  %v739_v51 = vmul.f32 %v737_v49, %v2912_v31  ;;  %1313 = vmatprep.subr.bf16.mxu0 %v2187_v46 }
  0xef   : > { %1314 = vmatpush1.bf16.msra.mxu0 %v2186_v47 }
  0xf0   : > { %v794_v52 = vpop.permute.xlu1 %793  ;;  %v792_v53 = vpop.permute.xlu0 %791  ;;  %v2189_v54 = vpack.c.bf16 %v739_v51, %v2681_v2  ;;  %v2188_v3 = vpack.c.bf16 %v738_v50, %v2671_v0  ;;  %v2943_v2 = vrot.slane %v878_v1, %v2816_v14  ;;  %v2946_v0 = vrot.slane %v878_v1, %v2818_v15 }
  0xf1   : > { %v796_v9 = vsel %vm795_vm5, %v792_v53, %v794_v52  ;;  %v797_v10 = vsel %vm795_vm5, %v794_v52, %v792_v53 }
  0xf2   : > { %1354 = vmatprep.subr.bf16.mxu1 %v2189_v54  ;;  %v809_v18 = vmul.f32 %v2936_v62, %v796_v9  ;;  %v810_v19 = vmul.f32 %v2939_v63, %v797_v10 }
  0xf3   : > { %1355 = vmatpush1.bf16.msra.mxu1 %v2188_v3 }
  0xf4   : > { %v825_v60 = vpop.permute.xlu1 %824  ;;  %v823_v61 = vpop.permute.xlu0 %822 }
  0xf5   : > { %v826_v27 = vsel %vm795_vm5, %v823_v61, %v825_v60  ;;  %v827_v28 = vsel %vm795_vm5, %v825_v60, %v823_v61  ;;  %v2996_v60 = vld [vmem:[%s3222_s2] sm:$0xf] }
  0xf6   : > { %v828_v39 = vmul.f32 %v826_v27, %v2936_v62  ;;  %v829_v40 = vmul.f32 %v827_v28, %v2939_v63 }
  0xf8   : > { %v884_v12 = vpop.permute.xlu1 %883  ;;  %v882_v13 = vpop.permute.xlu0 %881 }
  0xf9   : > { %v886_v16 = vsel %vm885_vm6, %v882_v13, %v884_v12  ;;  %v887_v17 = vsel %vm885_vm6, %v884_v12, %v882_v13 }
  0xfa   : > { %v899_v22 = vmul.f32 %v2943_v2, %v886_v16  ;;  %v900_v25 = vmul.f32 %v2946_v0, %v887_v17 }
  0xfc   : > { %v915_v29 = vpop.permute.xlu1 %914  ;;  %v913_v32 = vpop.permute.xlu0 %912  ;;  %v2195_v33 = vpack.c.bf16 %v900_v25, %v810_v19  ;;  %v2194_v34 = vpack.c.bf16 %v899_v22, %v809_v18 }
  0xfd   : > { %v916_v35 = vsel %vm885_vm6, %v913_v32, %v915_v29  ;;  %v917_v36 = vsel %vm885_vm6, %v915_v29, %v913_v32 }
  0xfe   : > { %v918_v41 = vmul.f32 %v916_v35, %v2943_v2  ;;  %v919_v42 = vmul.f32 %v917_v36, %v2946_v0  ;;  %1315 = vmatprep.subr.bf16.mxu0 %v2195_v33 }
  0xff   : > { %1316 = vmatpush1.bf16.msra.mxu0 %v2194_v34 }
 0x100   : > { %v974_v43 = vpop.permute.xlu1 %973  ;;  %v972_v44 = vpop.permute.xlu0 %971  ;;  %v2197_v45 = vpack.c.bf16 %v919_v42, %v829_v40  ;;  %v2196_v46 = vpack.c.bf16 %v918_v41, %v828_v39 }
 0x101   : > { %v976_v14 = vsel %vm975_vm7, %v972_v44, %v974_v43  ;;  %v977_v15 = vsel %vm975_vm7, %v974_v43, %v972_v44 }
 0x102   : > { %v989_v47 = vmul.f32 %v2970_v37, %v976_v14  ;;  %v990_v48 = vmul.f32 %v2973_v38, %v977_v15  ;;  %1356 = vmatprep.subr.bf16.mxu1 %v2197_v45 }
 0x103   : > { %1357 = vmatpush1.bf16.msra.mxu1 %v2196_v46 }
 0x104   : > { %v2202_v49 = vpack.c.bf16 %v989_v47, %v989_v47  ;;  %v2203_v50 = vpack.c.bf16 %v990_v48, %v990_v48  ;;  %v1005_v51 = vpop.permute.xlu1 %1004  ;;  %v1003_v52 = vpop.permute.xlu0 %1002 }
 0x105   : > { %v1006_v53 = vsel %vm975_vm7, %v1003_v52, %v1005_v51  ;;  %v1007_v54 = vsel %vm975_vm7, %v1005_v51, %v1003_v52 }
 0x106   : > { %v1008_v3 = vmul.f32 %v1006_v53, %v2970_v37  ;;  %v1009_v59 = vmul.f32 %v1007_v54, %v2973_v38  ;;  %2087 = vmatprep.subr.msk.bf16.mxu0 %vm1284_vm8, %v2203_v50  ;;  %v1286_v1 = vsel %vm1284_vm8, %v2202_v49, 0 }
 0x107   : > { %1318 = vmatpush1.bf16.msra.mxu0 %v1286_v1 }
 0x108   : > { %v2204_v61 = vpack.c.bf16 %v1008_v3, %v1008_v3  ;;  %v2205_v9 = vpack.c.bf16 %v1009_v59, %v1009_v59  ;;  %v349_v10 = vpop.permute.xlu1 %348  ;;  %v347_v12 = vpop.permute.xlu0 %346 }
 0x109   : > { %v350_v13 = vsel %vm298_vm0, %v347_v12, %v349_v10  ;;  %v351_v16 = vsel %vm298_vm0, %v349_v10, %v347_v12 }
 0x10a   : > { %v352_v17 = vmul.f32 %v351_v16, %v2826_v20  ;;  %v353_v18 = vmul.f32 %v350_v13, %v2829_v21  ;;  %2089 = vmatprep.subr.msk.bf16.mxu1 %vm1284_vm8, %v2205_v9  ;;  %v1292_v19 = vsel %vm1284_vm8, %v2204_v61, 0  ;;  %2088 = vmatmul.mubr.msk.bf16.vlgmr.msra.gmra.mrb[0].mxu0 %vm1280_vm9, %v2996_v60 }
 0x10b   : > { %1359 = vmatpush1.bf16.msra.mxu1 %v1292_v19  ;;  %1423 = vmatprep.mubr.bf16.mxu0 %v2472_v8 }
 0x10c   : > { %v369_v22 = vpop.permute.xlu1 %368  ;;  %v367_v25 = vpop.permute.xlu0 %366 }
 0x10d   : > { %v370_v26 = vsel %vm298_vm0, %v367_v25, %v369_v22  ;;  %v371_v27 = vsel %vm298_vm0, %v369_v22, %v367_v25 }
 0x10e   : > { %v372_v28 = vmul.f32 %v371_v27, %v2826_v20  ;;  %v373_v29 = vmul.f32 %v370_v26, %v2829_v21  ;;  %2090 = vmatmul.mubr.msk.bf16.vlgmr.msra.gmra.mrb[0].mxu1 %vm1280_vm9, %v2996_v60 }
 0x10f   : > { %1464 = vmatprep.mubr.bf16.mxu1 %v2472_v8 }
 0x110   : > { %v440_v32 = vpop.permute.xlu1 %439  ;;  %v438_v33 = vpop.permute.xlu0 %437 }
 0x111   : > { %v441_v34 = vsel %vm391_vm1, %v438_v33, %v440_v32  ;;  %v442_v35 = vsel %vm391_vm1, %v440_v32, %v438_v33 }
 0x112   : > { %v443_v36 = vmul.f32 %v442_v35, %v2839_v23  ;;  %v444_v39 = vmul.f32 %v441_v34, %v2842_v24 }
 0x114   : > { %v2174_v20 = vpack.c.bf16 %v443_v36, %v352_v17  ;;  %v459_v40 = vpop.permute.xlu1 %458  ;;  %v457_v21 = vpop.permute.xlu0 %456  ;;  %v2175_v41 = vpack.c.bf16 %v444_v39, %v353_v18 }
 0x115   : > { %v460_v42 = vsel %vm391_vm1, %v457_v21, %v459_v40  ;;  %v461_v43 = vsel %vm391_vm1, %v459_v40, %v457_v21 }
 0x116   : > { %v462_v44 = vmul.f32 %v461_v43, %v2839_v23  ;;  %v463_v45 = vmul.f32 %v460_v42, %v2842_v24  ;;  %1391 = vmatprep.subr.bf16.mxu0 %v2175_v41 }
 0x117   : > { %1392 = vmatpush1.bf16.msra.mxu0 %v2174_v20 }
 0x118   : > { %v2176_v46 = vpack.c.bf16 %v462_v44, %v372_v28  ;;  %v530_v14 = vpop.permute.xlu1 %529  ;;  %v528_v15 = vpop.permute.xlu0 %527  ;;  %v2177_v47 = vpack.c.bf16 %v463_v45, %v373_v29 }
 0x119   : > { %v531_v50 = vsel %vm481_vm2, %v528_v15, %v530_v14  ;;  %v532_v51 = vsel %vm481_vm2, %v530_v14, %v528_v15 }
 0x11a   : > { %1432 = vmatprep.subr.bf16.mxu1 %v2177_v47  ;;  %v533_v54 = vmul.f32 %v532_v51, %v2875_v55  ;;  %v534_v3 = vmul.f32 %v531_v50, %v2878_v56 }
 0x11b   : > { %1433 = vmatpush1.bf16.msra.mxu1 %v2176_v46 }
 0x11c   : > { %v549_v48 = vpop.permute.xlu1 %548  ;;  %v547_v49 = vpop.permute.xlu0 %546 }
 0x11d   : > { %v550_v61 = vsel %vm481_vm2, %v547_v49, %v549_v48  ;;  %v551_v9 = vsel %vm481_vm2, %v549_v48, %v547_v49 }
 0x11e   : > { %v552_v19 = vmul.f32 %v551_v9, %v2875_v55  ;;  %v553_v22 = vmul.f32 %v550_v61, %v2878_v56 }
 0x120   : > { %v620_v52 = vpop.permute.xlu1 %619  ;;  %v618_v23 = vpop.permute.xlu0 %617 }
 0x121   : > { %v621_v24 = vsel %vm571_vm3, %v618_v23, %v620_v52  ;;  %v622_v53 = vsel %vm571_vm3, %v620_v52, %v618_v23 }
 0x122   : > { %v623_v59 = vmul.f32 %v622_v53, %v2882_v57  ;;  %v624_v1 = vmul.f32 %v621_v24, %v2885_v58 }
 0x124   : > { %v2182_v10 = vpack.c.bf16 %v623_v59, %v533_v54  ;;  %v639_v12 = vpop.permute.xlu1 %638  ;;  %v637_v13 = vpop.permute.xlu0 %636  ;;  %v2183_v16 = vpack.c.bf16 %v624_v1, %v534_v3 }
 0x125   : > { %v640_v17 = vsel %vm571_vm3, %v637_v13, %v639_v12  ;;  %v641_v18 = vsel %vm571_vm3, %v639_v12, %v637_v13 }
 0x126   : > { %v642_v25 = vmul.f32 %v641_v18, %v2882_v57  ;;  %v643_v26 = vmul.f32 %v640_v17, %v2885_v58  ;;  %1393 = vmatprep.subr.bf16.mxu0 %v2183_v16 }
 0x127   : > { %1394 = vmatpush1.bf16.msra.mxu0 %v2182_v10 }
 0x128   : > { %v2184_v27 = vpack.c.bf16 %v642_v25, %v552_v19  ;;  %v754_v28 = vpop.permute.xlu1 %753  ;;  %v752_v29 = vpop.permute.xlu0 %751  ;;  %v2185_v32 = vpack.c.bf16 %v643_v26, %v553_v22 }
 0x129   : > { %v755_v33 = vsel %vm705_vm4, %v752_v29, %v754_v28  ;;  %v756_v34 = vsel %vm705_vm4, %v754_v28, %v752_v29 }
 0x12a   : > { %v757_v55 = vmul.f32 %v755_v33, %v2909_v30  ;;  %v758_v56 = vmul.f32 %v756_v34, %v2912_v31  ;;  %1434 = vmatprep.subr.bf16.mxu1 %v2185_v32 }
 0x12b   : > { %1435 = vmatpush1.bf16.msra.mxu1 %v2184_v27 }
 0x12c   : > { %v2190_v57 = vpack.c.bf16 %v757_v55, %v2750_v5  ;;  %v773_v58 = vpop.permute.xlu1 %772  ;;  %v771_v35 = vpop.permute.xlu0 %770  ;;  %v2191_v36 = vpack.c.bf16 %v758_v56, %v2747_v4 }
 0x12d   : > { %v774_v39 = vsel %vm705_vm4, %v771_v35, %v773_v58  ;;  %v775_v20 = vsel %vm705_vm4, %v773_v58, %v771_v35 }
 0x12e   : > { %v776_v40 = vmul.f32 %v774_v39, %v2909_v30  ;;  %v777_v21 = vmul.f32 %v775_v20, %v2912_v31  ;;  %1395 = vmatprep.subr.bf16.mxu0 %v2191_v36 }
 0x12f   : > { %1396 = vmatpush1.bf16.msra.mxu0 %v2190_v57 }
 0x130   : > { %v2192_v41 = vpack.c.bf16 %v776_v40, %v2760_v7  ;;  %v844_v42 = vpop.permute.xlu1 %843  ;;  %v842_v5 = vpop.permute.xlu0 %841  ;;  %v2193_v43 = vpack.c.bf16 %v777_v21, %v2757_v6 }
 0x131   : > { %v845_v45 = vsel %vm795_vm5, %v842_v5, %v844_v42  ;;  %v846_v30 = vsel %vm795_vm5, %v844_v42, %v842_v5 }
 0x132   : > { %1436 = vmatprep.subr.bf16.mxu1 %v2193_v43  ;;  %v847_v6 = vmul.f32 %v845_v45, %v2936_v62  ;;  %v848_v15 = vmul.f32 %v846_v30, %v2939_v63 }
 0x133   : > { %1437 = vmatpush1.bf16.msra.mxu1 %v2192_v41 }
 0x134   : > { %v863_v4 = vpop.permute.xlu1 %862  ;;  %v861_v44 = vpop.permute.xlu0 %860 }
 0x135   : > { %v864_v49 = vsel %vm795_vm5, %v861_v44, %v863_v4  ;;  %v865_v50 = vsel %vm795_vm5, %v863_v4, %v861_v44 }
 0x136   : > { %v866_v3 = vmul.f32 %v864_v49, %v2936_v62  ;;  %v867_v59 = vmul.f32 %v865_v50, %v2939_v63 }
 0x138   : > { %v934_v46 = vpop.permute.xlu1 %933  ;;  %v932_v31 = vpop.permute.xlu0 %931 }
 0x139   : > { %v935_v14 = vsel %vm885_vm6, %v932_v31, %v934_v46  ;;  %v936_v7 = vsel %vm885_vm6, %v934_v46, %v932_v31 }
 0x13a   : > { %v937_v47 = vmul.f32 %v935_v14, %v2943_v2  ;;  %v938_v48 = vmul.f32 %v936_v7, %v2946_v0 }
 0x13c   : > { %v2198_v51 = vpack.c.bf16 %v937_v47, %v847_v6  ;;  %v953_v52 = vpop.permute.xlu1 %952  ;;  %v951_v23 = vpop.permute.xlu0 %950  ;;  %v2199_v24 = vpack.c.bf16 %v938_v48, %v848_v15 }
 0x13d   : > { %v954_v53 = vsel %vm885_vm6, %v951_v23, %v953_v52  ;;  %v955_v54 = vsel %vm885_vm6, %v953_v52, %v951_v23 }
 0x13e   : > { %v956_v1 = vmul.f32 %v954_v53, %v2943_v2  ;;  %v957_v61 = vmul.f32 %v955_v54, %v2946_v0  ;;  %1397 = vmatprep.subr.bf16.mxu0 %v2199_v24 }
 0x13f   : > { %1398 = vmatpush1.bf16.msra.mxu0 %v2198_v51 }
 0x140   : > { %v2200_v9 = vpack.c.bf16 %v956_v1, %v866_v3  ;;  %v1024_v10 = vpop.permute.xlu1 %1023  ;;  %v1022_v12 = vpop.permute.xlu0 %1021  ;;  %v2201_v13 = vpack.c.bf16 %v957_v61, %v867_v59 }
 0x141   : > { %v1025_v16 = vsel %vm975_vm7, %v1022_v12, %v1024_v10  ;;  %v1026_v17 = vsel %vm975_vm7, %v1024_v10, %v1022_v12 }
 0x142   : > { %v1027_v62 = vmul.f32 %v1025_v16, %v2970_v37  ;;  %v1028_v63 = vmul.f32 %v1026_v17, %v2973_v38  ;;  %1438 = vmatprep.subr.bf16.mxu1 %v2201_v13 }
 0x143   : > { %1439 = vmatpush1.bf16.msra.mxu1 %v2200_v9 }
 0x144   : > { %v2206_v2 = vpack.c.bf16 %v1027_v62, %v1027_v62  ;;  %v2207_v0 = vpack.c.bf16 %v1028_v63, %v1028_v63  ;;  %v1043_v18 = vpop.permute.xlu1 %1042  ;;  %v1041_v19 = vpop.permute.xlu0 %1040  ;;  %v3128_v62 = vld [vmem:[%s3223_s3] sm:$0xf] }
 0x145   : > { %v1044_v22 = vsel %vm975_vm7, %v1041_v19, %v1043_v18  ;;  %v1045_v25 = vsel %vm975_vm7, %v1043_v18, %v1041_v19 }
 0x146   : > { %v1046_v26 = vmul.f32 %v1044_v22, %v2970_v37  ;;  %v1047_v27 = vmul.f32 %v1045_v25, %v2973_v38  ;;  %2091 = vmatprep.subr.msk.bf16.mxu0 %vm1284_vm8, %v2207_v0  ;;  %v1298_v28 = vsel %vm1284_vm8, %v2206_v2, 0 }
 0x147   : > { %1400 = vmatpush1.bf16.msra.mxu0 %v1298_v28 }
 0x148   : > { %v2208_v29 = vpack.c.bf16 %v1046_v26, %v1046_v26  ;;  %v2209_v32 = vpack.c.bf16 %v1047_v27, %v1047_v27 }
 0x14a   : > { %2092 = vmatmul.mubr.msk.bf16.vlgmr.msra.gmra.mrb[4].mxu0 %vm1280_vm9, %v2996_v60  ;;  %2093 = vmatprep.subr.msk.bf16.mxu1 %vm1284_vm8, %v2209_v32  ;;  %v1304_v33 = vsel %vm1284_vm8, %v2208_v29, 0 }
 0x14b   : > { %1441 = vmatpush1.bf16.msra.mxu1 %v1304_v33  ;;  %1596 = vmatprep.mubr.bf16.mxu0 %v2472_v8 }
 0x14e   : > { %2094 = vmatmul.mubr.msk.bf16.vlgmr.msra.gmra.mrb[4].mxu1 %vm1280_vm9, %v2996_v60 }
 0x14f   : > { %1637 = vmatprep.mubr.bf16.mxu1 %v2472_v8 }
 0x155   : > { %v3119_v37 = vpop.permute.xlu0 %1097 }
 0x1dd   : > { %v1343_v38 = vpop.f32.mrb[0].mxu0 }
 0x1de   : > { %v1344_v34 = vadd.f32 %v1343_v38, %v3119_v37  ;;  %v1345_v55 = vpop.f32.mrb[1].mxu0 }
 0x1df   : > { %v1346_v56 = vadd.f32 %v1345_v55, %v3119_v37  ;;  %v1347_v57 = vpop.f32.mrb[2].mxu0 }
 0x1e0   : > { %v1348_v58 = vpop.f32.mrb[3].mxu0  ;;  %v1473_v35 = vand.u32 2147483647, %v1344_v34  ;;  %v1529_v7 = vsub.f32 0.0, %v1344_v34  ;;  %vm1513_vm10 = vcmp.gt.f32.partialorder %v1344_v34, 0.0 }
 0x1e1   : > { %v1384_v36 = vpop.f32.mrb[0].mxu1  ;;  %v1474_v60 = vand.u32 2147483647, %v1346_v56  ;;  %v1530_v15 = vsub.f32 0.0, %v1346_v56  ;;  %vm1514_vm11 = vcmp.gt.f32.partialorder %v1346_v56, 0.0 }
 0x1e2   : > { %v1385_v39 = vadd.f32 %v1384_v36, %v3119_v37  ;;  %v1386_v20 = vpop.f32.mrb[1].mxu1  ;;  %v1481_v40 = vsub.f32 0.0, %v1473_v35 }
 0x1e3   : > { %v1482_v21 = vsub.f32 0.0, %v1474_v60  ;;  %v1387_v41 = vadd.f32 %v1386_v20, %v3119_v37  ;;  %v1388_v42 = vpop.f32.mrb[2].mxu1 }
 0x1e4   : > { %v1389_v5 = vpop.f32.mrb[3].mxu1  ;;  %v1489_v43 = vmul.f32 1.442695, %v1481_v40  ;;  %v1475_v4 = vand.u32 2147483647, %v1385_v39  ;;  %vm1515_vm12 = vcmp.gt.f32.partialorder %v1385_v39, 0.0 }
 0x1e5   : > { %v1491_v44 = vmul.f32 1.442695, %v1482_v21  ;;  %v1476_v45 = vand.u32 2147483647, %v1387_v41  ;;  %v1531_v52 = vsub.f32 0.0, %v1385_v39  ;;  %v1532_v24 = vsub.f32 0.0, %v1387_v41 }
 0x1e6   : > { %2282 = vpow2.f32 %v1489_v43  ;;  %v1483_v30 = vsub.f32 0.0, %v1475_v4  ;;  %vm1516_vm13 = vcmp.gt.f32.partialorder %v1387_v41, 0.0 }
 0x1e7   : > { %2284 = vpow2.f32 %v1491_v44  ;;  %v1484_v46 = vsub.f32 0.0, %v1476_v45 }
 0x1e8   : > { %v1493_v31 = vmul.f32 1.442695, %v1483_v30 }
 0x1e9   : > { %v1495_v14 = vmul.f32 1.442695, %v1484_v46 }
 0x1ea   : > { %2286 = vpow2.f32 %v1493_v31 }
 0x1eb   : > { %2288 = vpow2.f32 %v1495_v14 }
 0x1f0   : > { %v2283_v6 = vpop.eup %2282 }
 0x1f1   : > { %v2285_v47 = vpop.eup %2284  ;;  %v2095_v48 = vadd.f32 -1.0, %v2283_v6 }
 0x1f2   : > { %v2096_v49 = vadd.f32 -1.0, %v2285_v47 }
 0x1f3   : > { %v1521_v50 = vsel %vm1513_vm10, %v1344_v34, %v2095_v48  ;;  %v1537_v51 = vsel %vm1513_vm10, %v2095_v48, %v1529_v7 }
 0x1f4   : > { %v2287_v23 = vpop.eup %2286  ;;  %v1522_v53 = vsel %vm1514_vm11, %v1346_v56, %v2096_v49  ;;  %v1538_v54 = vsel %vm1514_vm11, %v2096_v49, %v1530_v15  ;;  %v1545_v3 = vpack.c.bf16 %v1537_v51, %v1521_v50 }
 0x1f5   : > { %v2289_v59 = vpop.eup %2288  ;;  %v1546_v1 = vpack.c.bf16 %v1538_v54, %v1522_v53  ;;  %v2097_v61 = vadd.f32 -1.0, %v2287_v23  ;;  %v3144_v23 = vpop.permute.xlu1 %1557 }
 0x1f6   : > { %v2098_v9 = vadd.f32 -1.0, %v2289_v59 }
 0x1f7   : > { %1564 = vmatprep.subr.bf16.mxu0 %v1546_v1  ;;  %v1523_v10 = vsel %vm1515_vm12, %v1385_v39, %v2097_v61  ;;  %v1539_v12 = vsel %vm1515_vm12, %v2097_v61, %v1531_v52 }
 0x1f8   : > { %v1524_v13 = vsel %vm1516_vm13, %v1387_v41, %v2098_v9  ;;  %v1540_v16 = vsel %vm1516_vm13, %v2098_v9, %v1532_v24  ;;  %1565 = vmatpush1.bf16.msra.mxu0 %v1545_v3  ;;  %v1547_v17 = vpack.c.bf16 %v1539_v12, %v1523_v10 }
 0x1f9   : > { %v1548_v63 = vpack.c.bf16 %v1540_v16, %v1524_v13 }
 0x1fb   : > { %1605 = vmatprep.subr.bf16.mxu1 %v1548_v63  ;;  %2103 = vmatmul.mubr.msk.bf16.vlgmr.msra.gmra.mrb[8].mxu0 %vm1560_vm14, %v3128_v62 }
 0x1fc   : > { %1606 = vmatpush1.bf16.msra.mxu1 %v1547_v17  ;;  %1678 = vmatprep.mubr.bf16.mxu0 %v2472_v8 }
 0x1ff   : > { %2104 = vmatmul.mubr.msk.bf16.vlgmr.msra.gmra.mrb[8].mxu1 %vm1560_vm14, %v3128_v62 }
 0x200   : > { %1719 = vmatprep.mubr.bf16.mxu1 %v2472_v8 }
 0x21d   : > { %v1425_v2 = vpop.f32.mrb[4].mxu0 }
 0x21e   : > { %v1426_v0 = vadd.f32 %v1425_v2, %v3119_v37  ;;  %v1427_v18 = vpop.f32.mrb[5].mxu0 }
 0x21f   : > { %v1428_v19 = vadd.f32 %v1427_v18, %v3119_v37  ;;  %v1429_v22 = vpop.f32.mrb[6].mxu0 }
 0x220   : > { %v1477_v25 = vand.u32 2147483647, %v1426_v0  ;;  %v1430_v26 = vpop.f32.mrb[7].mxu0  ;;  %v1533_v41 = vsub.f32 0.0, %v1426_v0  ;;  %vm1517_vm15 = vcmp.gt.f32.partialorder %v1426_v0, 0.0 }
 0x221   : > { %v1478_v27 = vand.u32 2147483647, %v1428_v19  ;;  %v1466_v28 = vpop.f32.mrb[4].mxu1  ;;  %vm1518_vm0 = vcmp.gt.f32.partialorder %v1428_v19, 0.0 }
 0x222   : > { %v1485_v29 = vsub.f32 0.0, %v1477_v25  ;;  %v1467_v32 = vadd.f32 %v1466_v28, %v3119_v37  ;;  %v1468_v33 = vpop.f32.mrb[5].mxu1 }
 0x223   : > { %v1486_v11 = vsub.f32 0.0, %v1478_v27  ;;  %v1469_v38 = vadd.f32 %v1468_v33, %v3119_v37  ;;  %v1470_v34 = vpop.f32.mrb[6].mxu1  ;;  %v1534_v37 = vsub.f32 0.0, %v1428_v19 }
 0x224   : > { %v1497_v8 = vmul.f32 1.442695, %v1485_v29  ;;  %v1479_v55 = vand.u32 2147483647, %v1467_v32  ;;  %v1471_v58 = vpop.f32.mrb[7].mxu1  ;;  %v1535_v31 = vsub.f32 0.0, %v1467_v32 }
 0x225   : > { %v1499_v56 = vmul.f32 1.442695, %v1486_v11  ;;  %v1480_v57 = vand.u32 2147483647, %v1469_v38  ;;  %vm1519_vm1 = vcmp.gt.f32.partialorder %v1467_v32, 0.0  ;;  %v1536_v7 = vsub.f32 0.0, %v1469_v38 }
 0x226   : > { %2290 = vpow2.f32 %v1497_v8  ;;  %v1487_v35 = vsub.f32 0.0, %v1479_v55  ;;  %vm1520_vm2 = vcmp.gt.f32.partialorder %v1469_v38, 0.0  ;;  %v1728_v11 = vld [vmem:[%s2660_s8] sm:$0xff]  ;;  %v1729_v34 = vld [vmem:[%s2660_s8 + $0x8] sm:$0xff] }
 0x227   : > { %2292 = vpow2.f32 %v1499_v56  ;;  %v1488_v36 = vsub.f32 0.0, %v1480_v57 }
 0x228   : > { %v1501_v60 = vmul.f32 1.442695, %v1487_v35 }
 0x229   : > { %v1503_v39 = vmul.f32 1.442695, %v1488_v36 }
 0x22a   : > { %2294 = vpow2.f32 %v1501_v60  ;;  %v2109_v60 = vld [vmem:[%s2660_s8 + $0x10] sm:$0xff] }
 0x22b   : > { %2296 = vpow2.f32 %v1503_v39 }
 0x230   : > { %v2291_v20 = vpop.eup %2290 }
 0x231   : > { %v2293_v40 = vpop.eup %2292  ;;  %v2099_v21 = vadd.f32 -1.0, %v2291_v20  ;;  %v2110_v20 = vld [vmem:[%s2660_s8 + $0x18] sm:$0xff] }
 0x232   : > { %v2100_v42 = vadd.f32 -1.0, %v2293_v40 }
 0x233   : > { %v1525_v5 = vsel %vm1517_vm15, %v1426_v0, %v2099_v21  ;;  %v1541_v43 = vsel %vm1517_vm15, %v2099_v21, %v1533_v41 }
 0x234   : > { %v2295_v4 = vpop.eup %2294  ;;  %v1526_v44 = vsel %vm1518_vm0, %v1428_v19, %v2100_v42  ;;  %v1542_v45 = vsel %vm1518_vm0, %v2100_v42, %v1534_v37  ;;  %v1549_v6 = vpack.c.bf16 %v1541_v43, %v1525_v5 }
 0x235   : > { %v2297_v30 = vpop.eup %2296  ;;  %v2101_v46 = vadd.f32 -1.0, %v2295_v4  ;;  %v1550_v14 = vpack.c.bf16 %v1542_v45, %v1526_v44 }
 0x236   : > { %v2102_v15 = vadd.f32 -1.0, %v2297_v30 }
 0x237   : > { %1646 = vmatprep.subr.bf16.mxu0 %v1550_v14  ;;  %v1527_v47 = vsel %vm1519_vm1, %v1467_v32, %v2101_v46  ;;  %v1543_v48 = vsel %vm1519_vm1, %v2101_v46, %v1535_v31 }
 0x238   : > { %1647 = vmatpush1.bf16.msra.mxu0 %v1549_v6  ;;  %v1528_v49 = vsel %vm1520_vm2, %v1469_v38, %v2102_v15  ;;  %v1544_v50 = vsel %vm1520_vm2, %v2102_v15, %v1536_v7  ;;  %v1551_v52 = vpack.c.bf16 %v1543_v48, %v1527_v47 }
 0x239   : > { %v1552_v51 = vpack.c.bf16 %v1544_v50, %v1528_v49 }
 0x23b   : > { %2105 = vmatmul.mubr.msk.bf16.vlgmr.msra.gmra.mrb[12].mxu0 %vm1560_vm14, %v3128_v62  ;;  %1687 = vmatprep.subr.bf16.mxu1 %v1552_v51 }
 0x23c   : > { %1688 = vmatpush1.bf16.msra.mxu1 %v1551_v52 }
 0x23f   : > { %2106 = vmatmul.mubr.msk.bf16.vlgmr.msra.gmra.mrb[12].mxu1 %vm1560_vm14, %v3128_v62 }
 0x2ce   : > { %v1598_v24 = vpop.f32.mrb[8].mxu0 }
 0x2cf   : > { %v1599_v53 = vadd.f32 %v1598_v24, %v3144_v23  ;;  %v1600_v54 = vpop.f32.mrb[9].mxu0 }
 0x2d0   : > { %v1601_v3 = vadd.f32 %v1600_v54, %v3144_v23  ;;  %v1602_v59 = vpop.f32.mrb[10].mxu0 }
 0x2d1   : > { %v2107_v1 = vmul.f32 -1.442695, %v1599_v53  ;;  %v1603_v61 = vpop.f32.mrb[11].mxu0 }
 0x2d2   : > { %v1639_v9 = vpop.f32.mrb[8].mxu1  ;;  %v2108_v10 = vmul.f32 -1.442695, %v1601_v3 }
 0x2d3   : > { %2298 = vpow2.f32 %v2107_v1  ;;  %v1640_v12 = vadd.f32 %v1639_v9, %v3144_v23  ;;  %v1641_v13 = vpop.f32.mrb[9].mxu1 }
 0x2d4   : > { %2300 = vpow2.f32 %v2108_v10  ;;  %v1642_v16 = vadd.f32 %v1641_v13, %v3144_v23  ;;  %v1643_v17 = vpop.f32.mrb[10].mxu1 }
 0x2d5   : > { %v2111_v62 = vmul.f32 -1.442695, %v1640_v12  ;;  %v1644_v63 = vpop.f32.mrb[11].mxu1  ;;  %v2115_v17 = vld [vmem:[%s2660_s8 + $0x28] sm:$0xff] }
 0x2d6   : > { %v2112_v2 = vmul.f32 -1.442695, %v1642_v16 }
 0x2d7   : > { %2302 = vpow2.f32 %v2111_v62 }
 0x2d8   : > { %2304 = vpow2.f32 %v2112_v2 }
 0x2dd   : > { %v2299_v0 = vpop.eup %2298 }
 0x2de   : > { %v2301_v18 = vpop.eup %2300  ;;  %v1736_v19 = vadd.f32 1.0, %v2299_v0 }
 0x2df   : > { %v1737_v22 = vadd.f32 1.0, %v2301_v18 }
 0x2e0   : > { %2306 = vrcp.f32 %v1736_v19 }
 0x2e1   : > { %v2303_v25 = vpop.eup %2302  ;;  %2308 = vrcp.f32 %v1737_v22  ;;  %v2119_v22 = vld [vmem:[%s2660_s8 + $0x30] sm:$0xff] }
 0x2e2   : > { %v2305_v26 = vpop.eup %2304  ;;  %v1765_v27 = vadd.f32 1.0, %v2303_v25 }
 0x2e3   : > { %v1766_v28 = vadd.f32 1.0, %v2305_v26 }
 0x2e4   : > { %2310 = vrcp.f32 %v1765_v27  ;;  %v2120_v27 = vld [vmem:[%s2660_s8 + $0x38] sm:$0xff] }
 0x2e5   : > { %2312 = vrcp.f32 %v1766_v28 }
 0x2ea   : > { %v2307_v29 = vpop.eup %2306 }
 0x2eb   : > { %v2309_v32 = vpop.eup %2308  ;;  %v1744_v33 = vrot.slane %v2307_v29, 4 }
 0x2ec   : > { %v1745_v38 = vrot.slane %v2309_v32, 4 }
 0x2ed   : > { %v1748_v8 = vmul.f32 %v1744_v33, %v1599_v53 }
 0x2ee   : > { %v2311_v55 = vpop.eup %2310  ;;  %v1749_v56 = vmul.f32 %v1745_v38, %v1601_v3 }
 0x2ef   : > { %v2313_v57 = vpop.eup %2312  ;;  %v1750_v58 = vadd.f32 %v1748_v8, %v1728_v11  ;;  %v1773_v35 = vrot.slane %v2311_v55, 4 }
 0x2f0   : > { %v1751_v36 = vadd.f32 %v1749_v56, %v1729_v34  ;;  %v1774_v39 = vrot.slane %v2313_v57, 4 }
 0x2f1   : > { %v1777_v40 = vmul.f32 %v1773_v35, %v1640_v12  ;;  %v2114_v12 = vld [vmem:[%s2660_s8 + $0x20] sm:$0xff]  ;;  %s2388_s8 = scalar_lea.vmem %s3169_s10, 512 }
 0x2f2   : > { %v1754_v21 = vcombine.low %v1750_v58, %v1751_v36  ;;  %v1778_v41 = vmul.f32 %v1774_v39, %v1642_v16  ;;  %p2389_p4 = scmp.ne.s32.totalorder %s3169_s10, %s2388_s8  ;;  %p2396_p13 = scmp.lt.s32.totalorder %s2394_s7, %s2388_s8 }
 0x2f3   : > { %v1779_v37 = vadd.f32 %v2109_v60, %v1777_v40 }
 0x2f4   : > { %1756 = vst [vmem:[%s3155_s19] sm:$0xff] %v1754_v21  ;;  %v1780_v42 = vadd.f32 %v2110_v20, %v1778_v41  ;;  %p2390_p6 = pnand %p2389_p4, %p2605_p12  ;;  %p2397_p3 = por %p2396_p13, %p2395_p10 }
 0x2f6   : > { %v1783_v5 = vcombine.low %v1779_v37, %v1780_v42  ;;  %p2391_p8 = pneg %p2390_p6 }
 0x2f8   : > { %2113 = vst [vmem:[%s3155_s19 + $0x8] sm:$0xff] %v1783_v5  ;;  %p2398_p7 = pnand %p2397_p3, %p2391_p8 }
 0x30e   : > { %v1680_v43 = vpop.f32.mrb[12].mxu0 }
 0x30f   : > { %v1681_v4 = vadd.f32 %v1680_v43, %v3144_v23  ;;  %v1682_v44 = vpop.f32.mrb[13].mxu0 }
 0x310   : > { %v1683_v45 = vadd.f32 %v1682_v44, %v3144_v23  ;;  %v1684_v30 = vpop.f32.mrb[14].mxu0 }
 0x311   : > { %v2116_v46 = vmul.f32 -1.442695, %v1681_v4  ;;  %v1685_v31 = vpop.f32.mrb[15].mxu0 }
 0x312   : > { %v2117_v14 = vmul.f32 -1.442695, %v1683_v45  ;;  %v1721_v7 = vpop.f32.mrb[12].mxu1 }
 0x313   : > { %2314 = vpow2.f32 %v2116_v46  ;;  %v1722_v6 = vadd.f32 %v1721_v7, %v3144_v23  ;;  %v1723_v15 = vpop.f32.mrb[13].mxu1 }
 0x314   : > { %2316 = vpow2.f32 %v2117_v14  ;;  %v1724_v47 = vadd.f32 %v1723_v15, %v3144_v23  ;;  %v1725_v48 = vpop.f32.mrb[14].mxu1 }
 0x315   : > { %v2121_v49 = vmul.f32 -1.442695, %v1722_v6  ;;  %v1726_v50 = vpop.f32.mrb[15].mxu1 }
 0x316   : > { %v2122_v51 = vmul.f32 -1.442695, %v1724_v47 }
 0x317   : > { %2318 = vpow2.f32 %v2121_v49 }
 0x318   : > { %2320 = vpow2.f32 %v2122_v51 }
 0x31d   : > { %v2315_v52 = vpop.eup %2314 }
 0x31e   : > { %v2317_v24 = vpop.eup %2316  ;;  %v1795_v53 = vadd.f32 1.0, %v2315_v52 }
 0x31f   : > { %v1796_v54 = vadd.f32 1.0, %v2317_v24 }
 0x320   : > { %2322 = vrcp.f32 %v1795_v53 }
 0x321   : > { %v2319_v3 = vpop.eup %2318  ;;  %2324 = vrcp.f32 %v1796_v54 }
 0x322   : > { %v2321_v59 = vpop.eup %2320  ;;  %v1825_v1 = vadd.f32 1.0, %v2319_v3 }
 0x323   : > { %v1826_v61 = vadd.f32 1.0, %v2321_v59 }
 0x324   : > { %2326 = vrcp.f32 %v1825_v1 }
 0x325   : > { %2328 = vrcp.f32 %v1826_v61 }
 0x32a   : > { %v2323_v23 = vpop.eup %2322 }
 0x32b   : > { %v2325_v9 = vpop.eup %2324  ;;  %v1803_v10 = vrot.slane %v2323_v23, 4 }
 0x32c   : > { %v1804_v13 = vrot.slane %v2325_v9, 4 }
 0x32d   : > { %v1807_v16 = vmul.f32 %v1803_v10, %v1681_v4 }
 0x32e   : > { %v2327_v62 = vpop.eup %2326  ;;  %v1808_v63 = vmul.f32 %v1804_v13, %v1683_v45 }
 0x32f   : > { %v2329_v2 = vpop.eup %2328  ;;  %v1809_v0 = vadd.f32 %v2114_v12, %v1807_v16  ;;  %v1833_v18 = vrot.slane %v2327_v62, 4 }
 0x330   : > { %v1810_v19 = vadd.f32 %v2115_v17, %v1808_v63  ;;  %v1834_v25 = vrot.slane %v2329_v2, 4 }
 0x331   : > { %v1837_v26 = vmul.f32 %v1833_v18, %v1722_v6 }
 0x332   : > { %v1813_v28 = vcombine.low %v1809_v0, %v1810_v19  ;;  %v1838_v29 = vmul.f32 %v1834_v25, %v1724_v47 }
 0x333   : > { %v1839_v32 = vadd.f32 %v2119_v22, %v1837_v26 }
 0x334   : > { %2118 = vst [vmem:[%s3155_s19 + $0x10] sm:$0xff] %v1813_v28  ;;  %v1840_v33 = vadd.f32 %v2120_v27, %v1838_v29 }
 0x336   : > { %v1843_v11 = vcombine.low %v1839_v32, %v1840_v33 }
 0x338   : > { %2123 = vst [vmem:[%s3155_s19 + $0x18] sm:$0xff] %v1843_v11 }
 0x339   : > { %2401 = shalt.err (!%p2398_p7)
}
 0x33a   : > { %s2402_s29 = scalar_lea.hbm %s3175_s16, 512  ;;  %s2406_s26 = scalar_lea.hbm %s3226_s6, 1024 }
 0x33b   : > { %p2403_p9 = scmp.ne.s32.totalorder %s3175_s16, %s2402_s29  ;;  %p2407_p5 = scmp.lt.u32.totalorder %s3175_s16, %s3226_s6 }
 0x33c   : > { %p2408_p11 = scmp.lt.u32.totalorder %s2406_s26, %s2402_s29  ;;  %p2410_p4 = scmp.lt.u32.totalorder %s2402_s29, %s3175_s16 }
 0x33d   : > { %p2404_p1 = pnand %p2403_p9, %p2605_p12 }
 0x33e   : > { %p2409_p2 = por %p2408_p11, %p2407_p5 }
 0x33f   : > { %p2405_p0 = pneg %p2404_p1 }
 0x340   : > { %p2411_p6 = por %p2410_p4, %p2409_p2 }
 0x342   : > { %p2412_p8 = pnand %p2411_p6, %p2405_p0 }
 0x344   : > { %2415 = shalt.err (!%p2412_p8)
}
 0x345   : > { %s2474_s30 = smov 128   ;;  %s2475_s15 = smov 8  }
 0x346   : > { %2216 = dma.vmem_to_hbm [thread:$0]  (%p2605_p12), %s3169_s10, 512, %s3175_s16, %s1848_s18, %s2474_s30, %s2474_s30, %s2475_s15  }
 0x347 PF: > { %s1877_s8 = sand.u32 1, %s2446_s21   ;;  %p3241_p10 = scmp.ne.s32.totalorder %s3231_s28, 0 }
 0x348   : > { %p3242_p13 = scmp.ge.s32.totalorder %s2458_s24, 2  ;;  %s1878_s25 = scalar_lea.sflag [#allocation5], %s1877_s8 }
 0x34a   : > { %p2227_p3 = pnand %p3242_p13, %p3241_p10 }
 0x34c   : > { %2441 = dma.done.wait (!%p2227_p3), %s1878_s25, 512  }
 0x34d   : > { %2443 = vsyncadd (!%p2227_p3), %s1878_s25, 4294966784  ;;  %p20_p7 = scmp.ge.s32.totalorder %s2567_s9, 4   ;;  %s3243_s21 = smov %s2450_s22 }
 0x34e   : > { %s3244_s22 = smov %s2454_s23  ;;  %s3245_s23 = smov %s2601_s13 }
 0x34f   : > { %s3246_s24 = smov %s2567_s9  ;;  %22 = sbr.rel (!%p20_p7) target bundleno = 6 (0x6), region = 106 }
 0x356   :  { %1883 = vsyncpa [#allocation4], 1 }
 0x357   :  { %1885 = vsyncpa [#allocation4 + $0x1], 1 }
 0x358   :  { %1886 = vsyncpa [#allocation7], 1 }
 0x359   :  { %1887 = vsyncpa [#allocation5], 1 }
 0x35a   :  { %1889 = vsyncpa [#allocation5 + $0x1], 1 }

</bundles_post_ra>
